<compile_context>
chip_gen: v7x
topology: tpu7x:2x2x1
jax: 0.10.0
libtpu: 0.0.40
codegen_flags: <defaults>
</compile_context>

<pallas_src>
import functools

import jax
import jax.numpy as jnp
from jax.experimental import pallas as pl
from jax.experimental.pallas import tpu as pltpu


def _round_up(x, m):
    return (x + m - 1) // m * m


def _choose_tb(B, tb_req):
    """Batch tile: multiple of 256, >= 256, and >= 2 grid steps when possible."""
    tb = max(256, _round_up(min(tb_req, B), 256))
    half = _round_up(B, 256) // 2
    if half >= 256:                       # batch big enough for 2+ tiles
        tb = min(tb, _round_up(half, 256))
    return tb


# ----------------------------------------------------------------------------
# Kernel: whole D2RL MLP for one batch tile, all weights resident in VMEM.
#   state_ref : (tb, Dp)   bf16
#   ws_ref    : (Dp, 4H)   bf16   [w1 | w2s | w3s | w4s]
#   wh_ref    : (H, 3H)    bf16   [w2h | w3h | w4h]
#   b_ref     : (4, H)     f32    [b1; b2; b3; b4]
#   wo_ref    : (H, 128)   bf16   out_layer weight in column 0, rest zero
#   bo_ref    : (1, 128)   f32    out_layer bias in column 0
#   out_ref   : (tb, 128)  f32    lane-dense output block; column 0 is the value
# ----------------------------------------------------------------------------
def d2rl_critic_kernel(state_ref, ws_ref, wh_ref, b_ref, wo_ref, bo_ref, out_ref):
    f32 = jnp.float32
    H = wh_ref.shape[0]
    s = state_ref[...]                                          # bf16 MXU operand
    b = b_ref[...]                                              # (4, H) f32

    def dot(a, w):
        return jnp.dot(a, w, preferred_element_type=f32)

    # One wide, independent MXU pass: layer-1 term + all three skip terms.
    s_all = dot(s, ws_ref[...])                                 # (tb, 4H) f32

    # Layer 1
    x = jnp.maximum(s_all[:, 0:H] + b[0:1, :], 0.0)             # f32
    xb = x.astype(s.dtype)                                      # bf16 for MXU

    # Layers 2-4: relu(cat([x, s]) @ W + b) == relu(x @ Wh + s @ Ws + b)
    x = jnp.maximum(dot(xb, wh_ref[:, 0:H]) + s_all[:, H:2 * H] + b[1:2, :], 0.0)
    xb = x.astype(s.dtype)
    x = jnp.maximum(dot(xb, wh_ref[:, H:2 * H]) + s_all[:, 2 * H:3 * H] + b[2:3, :], 0.0)
    xb = x.astype(s.dtype)
    x = jnp.maximum(dot(xb, wh_ref[:, 2 * H:3 * H]) + s_all[:, 3 * H:4 * H] + b[3:4, :], 0.0)
    xb = x.astype(s.dtype)

    # Output head as a padded N=128 MXU matmul -> unmasked lane-dense store.
    out_ref[...] = (dot(xb, wo_ref[...]) + bo_ref[...]).astype(out_ref.dtype)


# ----------------------------------------------------------------------------
# Wrapper
# ----------------------------------------------------------------------------
@functools.partial(jax.jit, static_argnames=("tb",))
def d2rl_critic(state, params, *, tb=1024):
    B, D = state.shape
    Dp, H4 = params["ws"].shape
    H = H4 // 4
    assert params["wh"].shape == (H, 3 * H)
    assert H % 128 == 0 and Dp % 128 == 0

    tb = _choose_tb(B, tb)
    B_pad = _round_up(B, tb)
    n_tiles = B_pad // tb

    # State in kernel layout: bf16, batch padded to B_pad, features padded to Dp.
    # If the caller already stores state this way (recommended for RL loops on
    # v5e), no extra HBM pass is issued here.
    if state.dtype == jnp.bfloat16 and D == Dp and B == B_pad:
        s = state
    else:
        s = jnp.pad(state.astype(jnp.bfloat16), ((0, B_pad - B), (0, Dp - D)))

    weights = (params["ws"], params["wh"], params["b"], params["wo"], params["bo"])

    # Grid-invariant weights: single-buffered (no pointless double buffering).
    def wspec(shape):
        return pl.BlockSpec(shape, lambda i: (0, 0), pipeline_mode=pl.Buffered(1))

    weight_specs = [
        wspec((Dp, 4 * H)),   # ws
        wspec((H, 3 * H)),    # wh
        wspec((4, H)),        # biases
        wspec((H, 128)),      # wo (padded)
        wspec((1, 128)),      # bo (padded row)
    ]

    state_spec = pl.BlockSpec((tb, Dp), lambda i: (i, 0))       # default 2-deep pipeline
    out_spec = pl.BlockSpec((tb, 128), lambda i: (i, 0))        # lane-dense, unmasked

    flops = 2 * B_pad * (Dp * 4 * H + 3 * H * H + H * 128)
    bytes_accessed = int(
        s.size * s.dtype.itemsize
        + sum(w.size * w.dtype.itemsize for w in weights)
        + B_pad * 128 * 4
    )

    out = pl.pallas_call(
        d2rl_critic_kernel,
        out_shape=jax.ShapeDtypeStruct((B_pad, 128), jnp.float32),
        grid_spec=pltpu.PrefetchScalarGridSpec(
            num_scalar_prefetch=0,
            grid=(n_tiles,),
            in_specs=[state_spec] + weight_specs,
            out_specs=out_spec,
        ),
        compiler_params=pltpu.CompilerParams(
            dimension_semantics=("parallel",),
            vmem_limit_bytes=32 * 1024 * 1024,
        ),
        cost_estimate=pl.CostEstimate(
            flops=flops, transcendentals=0, bytes_accessed=bytes_accessed),
    )(s, *weights)

    # Column 0 of the padded output block, minus batch padding.
    return out[:B, 0:1].astype(state.dtype)


# ----------------------------------------------------------------------------
# Deterministic parameter init (matches nn.Linear + xavier_uniform_, bias=0,
# out_layer.weight /= 100).  Weights are stored pre-transposed to (in, out),
# the concat-skip halves are split out, the state dim is zero-padded to a
# multiple of 128, and everything is packed into the kernel's slab layout.
# ----------------------------------------------------------------------------
def _xavier_uniform(key, fan_out, fan_in):
    bound = jnp.sqrt(6.0 / (fan_in + fan_out))
    # torch weight shape is (out, in)
    return jax.random.uniform(key, (fan_out, fan_in), jnp.float32, -bound, bound)


def init_params(key, input_dim, hidden_dim, output_dim, *, compute_dtype=jnp.bfloat16):
    assert output_dim == 1, "kernel is specialized for output_dim == 1 (module default)"
    assert hidden_dim % 128 == 0, "hidden_dim must be a multiple of 128 for this kernel"
    D, H, O = input_dim, hidden_dim, output_dim
    Dp = _round_up(D, 128)
    ks = jax.random.split(key, 5)

    def pad_rows(w):                                    # (D, H) -> (Dp, H), zero rows
        return jnp.pad(w, ((0, Dp - D), (0, 0)))

    w1 = pad_rows(_xavier_uniform(ks[0], H, D).T)       # (Dp, H)

    # layers 2-4: torch weight (H, H + D); cat order is [x, state]
    def split_layer(k):
        w_full = _xavier_uniform(k, H, H + D).T         # (H + D, H)
        return w_full[:H, :], pad_rows(w_full[H:, :])   # (H, H), (Dp, H)

    w2h, w2s = split_layer(ks[1])
    w3h, w3s = split_layer(ks[2])
    w4h, w4s = split_layer(ks[3])

    ws = jnp.concatenate([w1, w2s, w3s, w4s], axis=1)   # (Dp, 4H)
    wh = jnp.concatenate([w2h, w3h, w4h], axis=1)       # (H, 3H)
    b = jnp.zeros((4, H), jnp.float32)                  # biases init to 0

    wo = _xavier_uniform(ks[4], O, H) / 100.0           # (1, H), /=100 as in module
    wo_pad = jnp.zeros((H, 128), jnp.float32).at[:, 0:1].set(wo.T)
    bo_row = jnp.zeros((1, 128), jnp.float32)           # bias 0; column 0 is used

    cd = compute_dtype
    return {
        "ws": ws.astype(cd),
        "wh": wh.astype(cd),
        "b": b,
        "wo": wo_pad.astype(cd),
        "bo": bo_row,
    }


# ----------------------------------------------------------------------------
# Pure-JAX reference mirroring the kernel's precision (bf16 operands, f32 acc)
# ----------------------------------------------------------------------------
def d2rl_critic_ref(state, p):
    Dp, H4 = p["ws"].shape
    H = H4 // 4
    D = state.shape[1]
    s = jnp.pad(state.astype(jnp.bfloat16), ((0, 0), (0, Dp - D)))
    dot = lambda a, b: jnp.dot(a, b, preferred_element_type=jnp.float32)

    s_all = dot(s, p["ws"])
    x = jax.nn.relu(s_all[:, 0:H] + p["b"][0:1, :])
    xb = x.astype(jnp.bfloat16)
    x = jax.nn.relu(dot(xb, p["wh"][:, 0:H]) + s_all[:, H:2 * H] + p["b"][1:2, :])
    xb = x.astype(jnp.bfloat16)
    x = jax.nn.relu(dot(xb, p["wh"][:, H:2 * H]) + s_all[:, 2 * H:3 * H] + p["b"][2:3, :])
    xb = x.astype(jnp.bfloat16)
    x = jax.nn.relu(dot(xb, p["wh"][:, 2 * H:3 * H]) + s_all[:, 3 * H:4 * H] + p["b"][3:4, :])
    xb = x.astype(jnp.bfloat16)
    out = dot(xb, p["wo"]) + p["bo"]
    return out[:, 0:1].astype(state.dtype)


if __name__ == "__main__":
    key = jax.random.PRNGKey(0)
    kp, kx = jax.random.split(key)

    # Small, forward-consistent shapes (module defaults are 330/256/1).
    # B=300 exercises batch padding AND a 2-step parallel grid (tb auto-picks
    # 256 via the ">=2 tiles" rule); INPUT_DIM=72 exercises feature padding.
    B, INPUT_DIM, HIDDEN_DIM, OUTPUT_DIM = 300, 72, 128, 1

    params = init_params(kp, INPUT_DIM, HIDDEN_DIM, OUTPUT_DIM)
    state = jax.random.normal(kx, (B, INPUT_DIM), jnp.float32)

    out = d2rl_critic(state, params)
    out = jax.block_until_ready(out)

    ref = d2rl_critic_ref(state, params)
    assert out.shape == (B, OUTPUT_DIM), out.shape
    assert jnp.allclose(out, ref, atol=2e-3, rtol=2e-2), (
        float(jnp.max(jnp.abs(out - ref))))

    print("KERNEL_OK")
</pallas_src>

<mosaic_0001>
module attributes {stable_mosaic.version = 11 : i64} {
  func.func @d2rl_critic_kernel(%arg0: i32, %arg1: memref<256x128xbf16, #tpu.memory_space<vmem>>, %arg2: memref<128x512xbf16, #tpu.memory_space<vmem>>, %arg3: memref<128x384xbf16, #tpu.memory_space<vmem>>, %arg4: memref<4x128xf32, #tpu.memory_space<vmem>>, %arg5: memref<128x128xbf16, #tpu.memory_space<vmem>>, %arg6: memref<1x128xf32, #tpu.memory_space<vmem>>, %arg7: memref<256x128xf32, #tpu.memory_space<vmem>>) attributes {dimension_semantics = [#tpu.dimension_semantics<parallel>], iteration_bounds = array<i64: 2>, scalar_prefetch = 0 : i64, scratch_operands = 0 : i64, tpu.core_type = #tpu.core_type<tc>, window_params = [{transform_indices = @transform_0, window_bounds = array<i64: 256, 128>}, {pipeline_mode = #tpu.pipeline_mode<synchronous>, transform_indices = @transform_1, window_bounds = array<i64: 128, 512>}, {pipeline_mode = #tpu.pipeline_mode<synchronous>, transform_indices = @transform_2, window_bounds = array<i64: 128, 384>}, {pipeline_mode = #tpu.pipeline_mode<synchronous>, transform_indices = @transform_3, window_bounds = array<i64: 4, 128>}, {pipeline_mode = #tpu.pipeline_mode<synchronous>, transform_indices = @transform_4, window_bounds = array<i64: 128, 128>}, {pipeline_mode = #tpu.pipeline_mode<synchronous>, transform_indices = @transform_5, window_bounds = array<i64: 1, 128>}, {transform_indices = @transform_6, window_bounds = array<i64: 256, 128>}]} {
    %c0 = arith.constant 0 : index
    %c0_0 = arith.constant 0 : index
    %0 = vector.load %arg1[%c0, %c0_0] : memref<256x128xbf16, #tpu.memory_space<vmem>>, vector<256x128xbf16>
    %c0_1 = arith.constant 0 : index
    %c0_2 = arith.constant 0 : index
    %1 = vector.load %arg4[%c0_1, %c0_2] : memref<4x128xf32, #tpu.memory_space<vmem>>, vector<4x128xf32>
    %c0_3 = arith.constant 0 : index
    %c0_4 = arith.constant 0 : index
    %2 = vector.load %arg2[%c0_3, %c0_4] : memref<128x512xbf16, #tpu.memory_space<vmem>>, vector<128x512xbf16>
    %cst = arith.constant dense<0.000000e+00> : vector<256x512xf32>
    %3 = tpu.matmul %0, %2, %cst {dimension_numbers = #tpu.dot_dimension_numbers<[1], [0], [0], [1], [0, 0, 1, 1], [], []>} : vector<256x128xbf16>, vector<128x512xbf16>, vector<256x512xf32> -> vector<256x512xf32>
    %4 = vector.extract_strided_slice %3 {offsets = [0, 0], sizes = [256, 128], strides = [1, 1]} : vector<256x512xf32> to vector<256x128xf32>
    %5 = vector.extract_strided_slice %1 {offsets = [0, 0], sizes = [1, 128], strides = [1, 1]} : vector<4x128xf32> to vector<1x128xf32>
    %6 = vector.broadcast %5 : vector<1x128xf32> to vector<256x128xf32>
    %7 = arith.addf %4, %6 : vector<256x128xf32>
    %cst_5 = arith.constant 0.000000e+00 : f32
    %8 = vector.broadcast %cst_5 : f32 to vector<256x128xf32>
    %9 = arith.maximumf %7, %8 : vector<256x128xf32>
    %10 = arith.truncf %9 : vector<256x128xf32> to vector<256x128xbf16>
    %c0_6 = arith.constant 0 : index
    %c0_7 = arith.constant 0 : index
    %11 = vector.load %arg3[%c0_6, %c0_7] : memref<128x384xbf16, #tpu.memory_space<vmem>>, vector<128x128xbf16>
    %cst_8 = arith.constant dense<0.000000e+00> : vector<256x128xf32>
    %12 = tpu.matmul %10, %11, %cst_8 {dimension_numbers = #tpu.dot_dimension_numbers<[1], [0], [0], [1], [0, 0, 1, 1], [], []>} : vector<256x128xbf16>, vector<128x128xbf16>, vector<256x128xf32> -> vector<256x128xf32>
    %13 = vector.extract_strided_slice %3 {offsets = [0, 128], sizes = [256, 128], strides = [1, 1]} : vector<256x512xf32> to vector<256x128xf32>
    %14 = arith.addf %12, %13 : vector<256x128xf32>
    %15 = vector.extract_strided_slice %1 {offsets = [1, 0], sizes = [1, 128], strides = [1, 1]} : vector<4x128xf32> to vector<1x128xf32>
    %16 = vector.broadcast %15 : vector<1x128xf32> to vector<256x128xf32>
    %17 = arith.addf %14, %16 : vector<256x128xf32>
    %cst_9 = arith.constant 0.000000e+00 : f32
    %18 = vector.broadcast %cst_9 : f32 to vector<256x128xf32>
    %19 = arith.maximumf %17, %18 : vector<256x128xf32>
    %20 = arith.truncf %19 : vector<256x128xf32> to vector<256x128xbf16>
    %c0_10 = arith.constant 0 : index
    %c128 = arith.constant 128 : index
    %21 = vector.load %arg3[%c0_10, %c128] : memref<128x384xbf16, #tpu.memory_space<vmem>>, vector<128x128xbf16>
    %cst_11 = arith.constant dense<0.000000e+00> : vector<256x128xf32>
    %22 = tpu.matmul %20, %21, %cst_11 {dimension_numbers = #tpu.dot_dimension_numbers<[1], [0], [0], [1], [0, 0, 1, 1], [], []>} : vector<256x128xbf16>, vector<128x128xbf16>, vector<256x128xf32> -> vector<256x128xf32>
    %23 = vector.extract_strided_slice %3 {offsets = [0, 256], sizes = [256, 128], strides = [1, 1]} : vector<256x512xf32> to vector<256x128xf32>
    %24 = arith.addf %22, %23 : vector<256x128xf32>
    %25 = vector.extract_strided_slice %1 {offsets = [2, 0], sizes = [1, 128], strides = [1, 1]} : vector<4x128xf32> to vector<1x128xf32>
    %26 = vector.broadcast %25 : vector<1x128xf32> to vector<256x128xf32>
    %27 = arith.addf %24, %26 : vector<256x128xf32>
    %cst_12 = arith.constant 0.000000e+00 : f32
    %28 = vector.broadcast %cst_12 : f32 to vector<256x128xf32>
    %29 = arith.maximumf %27, %28 : vector<256x128xf32>
    %30 = arith.truncf %29 : vector<256x128xf32> to vector<256x128xbf16>
    %c0_13 = arith.constant 0 : index
    %c256 = arith.constant 256 : index
    %31 = vector.load %arg3[%c0_13, %c256] : memref<128x384xbf16, #tpu.memory_space<vmem>>, vector<128x128xbf16>
    %cst_14 = arith.constant dense<0.000000e+00> : vector<256x128xf32>
    %32 = tpu.matmul %30, %31, %cst_14 {dimension_numbers = #tpu.dot_dimension_numbers<[1], [0], [0], [1], [0, 0, 1, 1], [], []>} : vector<256x128xbf16>, vector<128x128xbf16>, vector<256x128xf32> -> vector<256x128xf32>
    %33 = vector.extract_strided_slice %3 {offsets = [0, 384], sizes = [256, 128], strides = [1, 1]} : vector<256x512xf32> to vector<256x128xf32>
    %34 = arith.addf %32, %33 : vector<256x128xf32>
    %35 = vector.extract_strided_slice %1 {offsets = [3, 0], sizes = [1, 128], strides = [1, 1]} : vector<4x128xf32> to vector<1x128xf32>
    %36 = vector.broadcast %35 : vector<1x128xf32> to vector<256x128xf32>
    %37 = arith.addf %34, %36 : vector<256x128xf32>
    %cst_15 = arith.constant 0.000000e+00 : f32
    %38 = vector.broadcast %cst_15 : f32 to vector<256x128xf32>
    %39 = arith.maximumf %37, %38 : vector<256x128xf32>
    %40 = arith.truncf %39 : vector<256x128xf32> to vector<256x128xbf16>
    %c0_16 = arith.constant 0 : index
    %c0_17 = arith.constant 0 : index
    %41 = vector.load %arg5[%c0_16, %c0_17] : memref<128x128xbf16, #tpu.memory_space<vmem>>, vector<128x128xbf16>
    %cst_18 = arith.constant dense<0.000000e+00> : vector<256x128xf32>
    %42 = tpu.matmul %40, %41, %cst_18 {dimension_numbers = #tpu.dot_dimension_numbers<[1], [0], [0], [1], [0, 0, 1, 1], [], []>} : vector<256x128xbf16>, vector<128x128xbf16>, vector<256x128xf32> -> vector<256x128xf32>
    %c0_19 = arith.constant 0 : index
    %c0_20 = arith.constant 0 : index
    %43 = vector.load %arg6[%c0_19, %c0_20] : memref<1x128xf32, #tpu.memory_space<vmem>>, vector<1x128xf32>
    %44 = vector.broadcast %43 : vector<1x128xf32> to vector<256x128xf32>
    %45 = arith.addf %42, %44 : vector<256x128xf32>
    %c0_21 = arith.constant 0 : index
    %c0_22 = arith.constant 0 : index
    %46 = vector.load %arg7[%c0_21, %c0_22] : memref<256x128xf32, #tpu.memory_space<vmem>>, vector<256x128xf32>
    tpu.vector_store %arg7[%c0_21, %c0_22], %45 {strides = array<i32>} : memref<256x128xf32, #tpu.memory_space<vmem>>, vector<256x128xf32>,
    return
  }
  func.func @transform_0(%arg0: i32) -> (i32, i32) {
    %c0_i32 = arith.constant 0 : i32
    %c0_i32_0 = arith.constant 0 : i32
    return %arg0, %c0_i32 : i32, i32
  }
  func.func @transform_1(%arg0: i32) -> (i32, i32) {
    %c0_i32 = arith.constant 0 : i32
    %c0_i32_0 = arith.constant 0 : i32
    %c0_i32_1 = arith.constant 0 : i32
    return %c0_i32, %c0_i32_0 : i32, i32
  }
  func.func @transform_2(%arg0: i32) -> (i32, i32) {
    %c0_i32 = arith.constant 0 : i32
    %c0_i32_0 = arith.constant 0 : i32
    %c0_i32_1 = arith.constant 0 : i32
    return %c0_i32, %c0_i32_0 : i32, i32
  }
  func.func @transform_3(%arg0: i32) -> (i32, i32) {
    %c0_i32 = arith.constant 0 : i32
    %c0_i32_0 = arith.constant 0 : i32
    %c0_i32_1 = arith.constant 0 : i32
    return %c0_i32, %c0_i32_0 : i32, i32
  }
  func.func @transform_4(%arg0: i32) -> (i32, i32) {
    %c0_i32 = arith.constant 0 : i32
    %c0_i32_0 = arith.constant 0 : i32
    %c0_i32_1 = arith.constant 0 : i32
    return %c0_i32, %c0_i32_0 : i32, i32
  }
  func.func @transform_5(%arg0: i32) -> (i32, i32) {
    %c0_i32 = arith.constant 0 : i32
    %c0_i32_0 = arith.constant 0 : i32
    %c0_i32_1 = arith.constant 0 : i32
    return %c0_i32, %c0_i32_0 : i32, i32
  }
  func.func @transform_6(%arg0: i32) -> (i32, i32) {
    %c0_i32 = arith.constant 0 : i32
    %c0_i32_0 = arith.constant 0 : i32
    return %arg0, %c0_i32 : i32, i32
  }
}

</mosaic_0001>

<bundles_post_ra>
// kernel: d2rl_critic.1
= control target key start
LH: loop header
LB: loop body
LE: loop exit
PB: predicated region body
PF: predicated region fallthrough
CT: control target
= control target key end

     0   :  { %s2824_s21 = smov 0   ;;  %s3663_s0 = inlined_call_operand.vmem [shape: bf16[512,128], index: 0, kind: input, shape index: {}]   ;;  %s3664_s1 = inlined_call_operand.vmem [shape: bf16[128,512], index: 1, kind: input, shape index: {}]   ;;  %s3665_s2 = inlined_call_operand.vmem [shape: bf16[128,384], index: 2, kind: input, shape index: {}]   ;;  %s3666_s3 = inlined_call_operand.vmem [shape: f32[4,128], index: 3, kind: input, shape index: {}]   ;;  %s3667_s4 = inlined_call_operand.vmem [shape: bf16[128,128], index: 4, kind: input, shape index: {}]   ;;  %s3668_s5 = inlined_call_operand.vmem [shape: f32[1,128], index: 5, kind: input, shape index: {}]   ;;  %s3669_s6 = inlined_call_operand.vmem [shape: f32[512,128], index: 6, kind: output, shape index: {}]  }
   0x1 LB: > { %s2294_s22 = sadd.s32 4294967295, %s2786_s21   ;;  %p2298_p0 = scmp.ge.s32.totalorder %s2786_s21, 1  ;;  %s2786_s21 = sphi %s2824_s21, %s16_s21  }
   0x2   : > { %p213_p1 = scmp.lt.s32.totalorder %s2786_s21, 3 }
   0x4   : > { %p214_p2 = pnand %p2298_p0, %p213_p1 }
   0x6   : > { %217 = sbr.rel (%p214_p2) target bundleno = 1277 (0x4fd), region = 44 }
   0xd   : > { %v2683_v0 = vld [vmem:[%s3664_s1 + $0x4] ss:$16 sps:$4 sm:$0xff]   ;;  %s2299_s25 = sshll.u32 %s2294_s22, 5  ;;  %v2685_v1 = vld [vmem:[%s3664_s1] ss:$16 sps:$4 sm:$0xff]   ;;  %v2788_v2 = vmov 0   ;;  %v963_v57 = vlaneseq }
   0xe   : > { %609 = vmatprep.mubr.bf16.mxu0 %v2788_v2  ;;  %p244_p3 = scmp.lt.s32.totalorder %s2299_s25, 63  ;;  %802 = vmatprep.mubr.bf16.mxu1 %v2788_v2  ;;  %v2686_v3 = vld [vmem:[%s3664_s1 + $0x24] ss:$16 sps:$4 sm:$0xff]   ;;  %v2688_v4 = vld [vmem:[%s3664_s1 + $0x20] ss:$16 sps:$4 sm:$0xff]  }
   0xf   : > { %577 = vmatprep.subr.bf16.mxu0 %v2683_v0  ;;  %v2689_v5 = vld [vmem:[%s3664_s1 + $0x44] ss:$16 sps:$4 sm:$0xff]   ;;  %v2691_v6 = vld [vmem:[%s3664_s1 + $0x40] ss:$16 sps:$4 sm:$0xff]   ;;  %v2731_v41 = vld [vmem:[%s3664_s1 + $0xc] ss:$16 sps:$4 sm:$0xff]  }
  0x10   : > { %578 = vmatpush1.bf16.msra.mxu0 %v2685_v1  ;;  %s3723_s25 = smov (!%p244_p3, %s2299_s25), 63  ;;  %v2692_v7 = vld [vmem:[%s3664_s1 + $0x64] ss:$16 sps:$4 sm:$0xff]   ;;  %v2694_v8 = vld [vmem:[%s3664_s1 + $0x60] ss:$16 sps:$4 sm:$0xff]   ;;  %770 = vmatprep.subr.bf16.mxu1 %v2731_v41  ;;  %v3043_v58 = vshrl.u32 %v963_v57, 7 }
  0x11   : > { %579 = vmatprep.subr.bf16.mxu0 %v2686_v3  ;;  %s2300_s10 = sshll.u32 %s3723_s25, 2  ;;  %v2695_v9 = vld [vmem:[%s3664_s1 + $0x84] ss:$16 sps:$4 sm:$0xff]   ;;  %v2697_v10 = vld [vmem:[%s3664_s1 + $0x80] ss:$16 sps:$4 sm:$0xff]   ;;  %s2302_s29 = sshll.u32 %s3723_s25, 3 }
  0x12   : > { %s2861_s17 = scalar_lea.vmem %s3663_s0, %s2300_s10  ;;  %v2698_v11 = vld [vmem:[%s3664_s1 + $0xa4] ss:$16 sps:$4 sm:$0xff]   ;;  %v2700_v12 = vld [vmem:[%s3664_s1 + $0xa0] ss:$16 sps:$4 sm:$0xff]   ;;  %v2733_v42 = vld [vmem:[%s3664_s1 + $0x8] ss:$16 sps:$4 sm:$0xff]   ;;  %s3594_s10 = scalar_lea.vmem %s3669_s6, %s2302_s29 }
  0x13   : > { %v2701_v13 = vld [vmem:[%s3664_s1 + $0xc4] ss:$16 sps:$4 sm:$0xff]   ;;  %v2703_v14 = vld [vmem:[%s3664_s1 + $0xc0] ss:$16 sps:$4 sm:$0xff]   ;;  %v2905_v21 = vld [vmem:[%s2861_s17 + $0x8] sm:$0xff]   ;;  %771 = vmatpush1.bf16.msra.mxu1 %v2733_v42  ;;  %v965_v59 = vsub.s32 0, %v3043_v58 }
  0x14   : > { %580 = vmatpush1.bf16.msra.mxu0 %v2688_v4  ;;  %v2704_v15 = vld [vmem:[%s3664_s1 + $0xe4] ss:$16 sps:$4 sm:$0xff]   ;;  %v2706_v16 = vld [vmem:[%s3664_s1 + $0xe0] ss:$16 sps:$4 sm:$0xff]   ;;  %v2918_v24 = vld [vmem:[%s2861_s17 + $0x18] sm:$0xff]  }
  0x15   : > { %581 = vmatprep.subr.bf16.mxu0 %v2689_v5  ;;  %v2723_v17 = vld [vmem:[%s3665_s2] ss:$12 sps:$4 sm:$0xff]   ;;  %v2724_v19 = vld [vmem:[%s3665_s2 + $0x18] ss:$12 sps:$4 sm:$0xff]   ;;  %v2725_v20 = vld [vmem:[%s3665_s2 + $0x30] ss:$12 sps:$4 sm:$0xff]  }
  0x16   : > { %v2894_v18 = vld [vmem:[%s2861_s17] sm:$0xff]   ;;  %v2726_v22 = vld [vmem:[%s3665_s2 + $0x48] ss:$12 sps:$4 sm:$0xff]   ;;  %v2938_v28 = vld [vmem:[%s2861_s17 + $0x38] sm:$0xff]  }
  0x17   : > { %v2913_v23 = vld [vmem:[%s2861_s17 + $0x10] sm:$0xff]   ;;  %v2923_v25 = vld [vmem:[%s2861_s17 + $0x20] sm:$0xff]   ;;  %v2928_v26 = vld [vmem:[%s2861_s17 + $0x28] sm:$0xff]  }
  0x18   : > { %582 = vmatpush1.bf16.msra.mxu0 %v2691_v6  ;;  %v2933_v27 = vld [vmem:[%s2861_s17 + $0x30] sm:$0xff]   ;;  %v2943_v29 = vld [vmem:[%s2861_s17 + $0x40] sm:$0xff]   ;;  %v2948_v30 = vld [vmem:[%s2861_s17 + $0x48] sm:$0xff]  }
  0x19   : > { %583 = vmatprep.subr.bf16.mxu0 %v2692_v7  ;;  %v2953_v31 = vld [vmem:[%s2861_s17 + $0x50] sm:$0xff]   ;;  %v2727_v32 = vld [vmem:[%s3665_s2 + $0x60] ss:$12 sps:$4 sm:$0xff]   ;;  %v2961_v33 = vld [vmem:[%s2861_s17 + $0x58] sm:$0xff]  }
  0x1a   : > { %v2728_v34 = vld [vmem:[%s3665_s2 + $0x78] ss:$12 sps:$4 sm:$0xff]   ;;  %v2729_v35 = vld [vmem:[%s3665_s2 + $0x90] ss:$12 sps:$4 sm:$0xff]   ;;  %v2730_v37 = vld [vmem:[%s3665_s2 + $0xa8] ss:$12 sps:$4 sm:$0xff]  }
  0x1b   : > { %v2972_v36 = vld [vmem:[%s2861_s17 + $0x60] sm:$0xff]   ;;  %v2980_v38 = vld [vmem:[%s2861_s17 + $0x68] sm:$0xff]   ;;  %v2985_v39 = vld [vmem:[%s2861_s17 + $0x70] sm:$0xff]  }
  0x1c   : > { %584 = vmatpush1.bf16.msra.mxu0 %v2694_v8  ;;  %v2990_v40 = vld [vmem:[%s2861_s17 + $0x78] sm:$0xff]   ;;  %v3050_v60 = vld [vmem:[%s3666_s3] sm:$0xf]  ;;  %v2755_v1 = vld [vmem:[%s3665_s2 + $0x4] ss:$12 sps:$4 sm:$0xff]  }
  0x1d   : > { %585 = vmatprep.subr.bf16.mxu0 %v2695_v9  ;;  %v2734_v43 = vld [vmem:[%s3664_s1 + $0x2c] ss:$16 sps:$4 sm:$0xff]   ;;  %v2736_v44 = vld [vmem:[%s3664_s1 + $0x28] ss:$16 sps:$4 sm:$0xff]   ;;  %v3054_v61 = vrot.slane %v3050_v60, %v965_v59  ;;  %v2757_v9 = vld [vmem:[%s3665_s2 + $0x34] ss:$12 sps:$4 sm:$0xff]  }
  0x1e   : > { %772 = vmatprep.subr.bf16.mxu1 %v2734_v43  ;;  %v2737_v45 = vld [vmem:[%s3664_s1 + $0x4c] ss:$16 sps:$4 sm:$0xff]   ;;  %v2739_v46 = vld [vmem:[%s3664_s1 + $0x48] ss:$16 sps:$4 sm:$0xff]  }
  0x1f   : > { %773 = vmatpush1.bf16.msra.mxu1 %v2736_v44  ;;  %v2740_v47 = vld [vmem:[%s3664_s1 + $0x6c] ss:$16 sps:$4 sm:$0xff]   ;;  %v2742_v48 = vld [vmem:[%s3664_s1 + $0x68] ss:$16 sps:$4 sm:$0xff]  }
  0x20   : > { %586 = vmatpush1.bf16.msra.mxu0 %v2697_v10  ;;  %774 = vmatprep.subr.bf16.mxu1 %v2737_v45  ;;  %v2743_v49 = vld [vmem:[%s3664_s1 + $0x8c] ss:$16 sps:$4 sm:$0xff]   ;;  %v2745_v50 = vld [vmem:[%s3664_s1 + $0x88] ss:$16 sps:$4 sm:$0xff]  }
  0x21   : > { %587 = vmatprep.subr.bf16.mxu0 %v2698_v11  ;;  %v2746_v51 = vld [vmem:[%s3664_s1 + $0xac] ss:$16 sps:$4 sm:$0xff]   ;;  %v2748_v52 = vld [vmem:[%s3664_s1 + $0xa8] ss:$16 sps:$4 sm:$0xff]  }
  0x22   : > { %v2749_v53 = vld [vmem:[%s3664_s1 + $0xcc] ss:$16 sps:$4 sm:$0xff]   ;;  %v2751_v54 = vld [vmem:[%s3664_s1 + $0xc8] ss:$16 sps:$4 sm:$0xff]  }
  0x23   : > { %775 = vmatpush1.bf16.msra.mxu1 %v2739_v46  ;;  %v2752_v55 = vld [vmem:[%s3664_s1 + $0xec] ss:$16 sps:$4 sm:$0xff]   ;;  %v2754_v56 = vld [vmem:[%s3664_s1 + $0xe8] ss:$16 sps:$4 sm:$0xff]  }
  0x24   : > { %588 = vmatpush1.bf16.msra.mxu0 %v2700_v12  ;;  %776 = vmatprep.subr.bf16.mxu1 %v2740_v47  ;;  %v2756_v3 = vld [vmem:[%s3665_s2 + $0x1c] ss:$12 sps:$4 sm:$0xff]  }
  0x25   : > { %589 = vmatprep.subr.bf16.mxu0 %v2701_v13 }
  0x27   : > { %777 = vmatpush1.bf16.msra.mxu1 %v2742_v48 }
  0x28   : > { %590 = vmatpush1.bf16.msra.mxu0 %v2703_v14  ;;  %778 = vmatprep.subr.bf16.mxu1 %v2743_v49  ;;  %v2758_v14 = vld [vmem:[%s3665_s2 + $0x4c] ss:$12 sps:$4 sm:$0xff]  }
  0x29   : > { %591 = vmatprep.subr.bf16.mxu0 %v2704_v15 }
  0x2b   : > { %779 = vmatpush1.bf16.msra.mxu1 %v2745_v50 }
  0x2c   : > { %592 = vmatpush1.bf16.msra.mxu0 %v2706_v16  ;;  %780 = vmatprep.subr.bf16.mxu1 %v2746_v51 }
  0x2d   : > { %2482 = vmatprep.subr.bf16.mxu0 %v2723_v17 }
  0x2f   : > { %610 = vmatmul.mubr.bf16.vlgmr.msra.gmra.mrb[0].mxu0 %v2894_v18  ;;  %781 = vmatpush1.bf16.msra.mxu1 %v2748_v52 }
  0x30   : > { %619 = vmatprep.mubr.bf16.mxu0 %v2788_v2  ;;  %2483 = vmatpush3.bf16.msra.mxu0 %v2723_v17 }
  0x31   : > { %2484 = vmatprep.subr.bf16.mxu0 %v2724_v19  ;;  %782 = vmatprep.subr.bf16.mxu1 %v2749_v53 }
  0x33   : > { %783 = vmatpush1.bf16.msra.mxu1 %v2751_v54 }
  0x34   : > { %2485 = vmatpush3.bf16.msra.mxu0 %v2724_v19  ;;  %784 = vmatprep.subr.bf16.mxu1 %v2752_v55 }
  0x35   : > { %2486 = vmatprep.subr.bf16.mxu0 %v2725_v20 }
  0x37   : > { %620 = vmatmul.mubr.bf16.gmra.mrb[4].mxu0 %v2905_v21  ;;  %785 = vmatpush1.bf16.msra.mxu1 %v2754_v56 }
  0x38   : > { %629 = vmatprep.mubr.bf16.mxu0 %v2788_v2  ;;  %2487 = vmatpush3.bf16.msra.mxu0 %v2725_v20  ;;  %v2759_v20 = vld [vmem:[%s3665_s2 + $0x64] ss:$12 sps:$4 sm:$0xff]  }
  0x39   : > { %2488 = vmatprep.subr.bf16.mxu0 %v2726_v22  ;;  %2530 = vmatprep.subr.bf16.mxu1 %v2755_v1 }
  0x3a   : > { %803 = vmatmul.mubr.bf16.vlgmr.msra.gmra.mrb[0].mxu1 %v2894_v18 }
  0x3b   : > { %812 = vmatprep.mubr.bf16.mxu1 %v2788_v2  ;;  %2531 = vmatpush3.bf16.msra.mxu1 %v2755_v1 }
  0x3c   : > { %2489 = vmatpush3.bf16.msra.mxu0 %v2726_v22  ;;  %2532 = vmatprep.subr.bf16.mxu1 %v2756_v3 }
  0x3d   : > { %2490 = vmatprep.subr.bf16.mxu0 %v2727_v32 }
  0x3f   : > { %630 = vmatmul.mubr.bf16.gmra.mrb[8].mxu0 %v2913_v23  ;;  %2533 = vmatpush3.bf16.msra.mxu1 %v2756_v3 }
  0x40   : > { %639 = vmatprep.mubr.bf16.mxu0 %v2788_v2  ;;  %2491 = vmatpush3.bf16.msra.mxu0 %v2727_v32 }
  0x41   : > { %2492 = vmatprep.subr.bf16.mxu0 %v2728_v34  ;;  %2534 = vmatprep.subr.bf16.mxu1 %v2757_v9 }
  0x42   : > { %813 = vmatmul.mubr.bf16.gmra.mrb[4].mxu1 %v2905_v21 }
  0x43   : > { %822 = vmatprep.mubr.bf16.mxu1 %v2788_v2  ;;  %2535 = vmatpush3.bf16.msra.mxu1 %v2757_v9 }
  0x44   : > { %2493 = vmatpush3.bf16.msra.mxu0 %v2728_v34  ;;  %2536 = vmatprep.subr.bf16.mxu1 %v2758_v14 }
  0x45   : > { %2494 = vmatprep.subr.bf16.mxu0 %v2729_v35 }
  0x47   : > { %640 = vmatmul.mubr.bf16.gmra.mrb[12].mxu0 %v2918_v24  ;;  %2537 = vmatpush3.bf16.msra.mxu1 %v2758_v14 }
  0x48   : > { %649 = vmatprep.mubr.bf16.mxu0 %v2788_v2  ;;  %2495 = vmatpush3.bf16.msra.mxu0 %v2729_v35 }
  0x49   : > { %2496 = vmatprep.subr.bf16.mxu0 %v2730_v37  ;;  %2538 = vmatprep.subr.bf16.mxu1 %v2759_v20 }
  0x4a   : > { %823 = vmatmul.mubr.bf16.gmra.mrb[8].mxu1 %v2913_v23 }
  0x4b   : > { %832 = vmatprep.mubr.bf16.mxu1 %v2788_v2  ;;  %2539 = vmatpush3.bf16.msra.mxu1 %v2759_v20 }
  0x4c   : > { %2497 = vmatpush3.bf16.msra.mxu0 %v2730_v37 }
  0x4f   : > { %650 = vmatmul.mubr.bf16.gmra.mrb[16].mxu0 %v2923_v25 }
  0x50   : > { %659 = vmatprep.mubr.bf16.mxu0 %v2788_v2 }
  0x52   : > { %833 = vmatmul.mubr.bf16.gmra.mrb[12].mxu1 %v2918_v24 }
  0x53   : > { %842 = vmatprep.mubr.bf16.mxu1 %v2788_v2 }
  0x57   : > { %660 = vmatmul.mubr.bf16.gmra.mrb[20].mxu0 %v2928_v26 }
  0x58   : > { %669 = vmatprep.mubr.bf16.mxu0 %v2788_v2 }
  0x5a   : > { %843 = vmatmul.mubr.bf16.gmra.mrb[16].mxu1 %v2923_v25 }
  0x5b   : > { %852 = vmatprep.mubr.bf16.mxu1 %v2788_v2 }
  0x5f   : > { %670 = vmatmul.mubr.bf16.gmra.mrb[24].mxu0 %v2933_v27 }
  0x60   : > { %679 = vmatprep.mubr.bf16.mxu0 %v2788_v2 }
  0x62   : > { %853 = vmatmul.mubr.bf16.gmra.mrb[20].mxu1 %v2928_v26 }
  0x63   : > { %862 = vmatprep.mubr.bf16.mxu1 %v2788_v2 }
  0x67   : > { %680 = vmatmul.mubr.bf16.gmra.mrb[28].mxu0 %v2938_v28 }
  0x68   : > { %689 = vmatprep.mubr.bf16.mxu0 %v2788_v2 }
  0x6a   : > { %863 = vmatmul.mubr.bf16.gmra.mrb[24].mxu1 %v2933_v27 }
  0x6b   : > { %872 = vmatprep.mubr.bf16.mxu1 %v2788_v2 }
  0x6f   : > { %690 = vmatmul.mubr.bf16.gmra.mrb[32].mxu0 %v2943_v29 }
  0x70   : > { %699 = vmatprep.mubr.bf16.mxu0 %v2788_v2 }
  0x72   : > { %873 = vmatmul.mubr.bf16.gmra.mrb[28].mxu1 %v2938_v28 }
  0x73   : > { %882 = vmatprep.mubr.bf16.mxu1 %v2788_v2 }
  0x77   : > { %700 = vmatmul.mubr.bf16.gmra.mrb[36].mxu0 %v2948_v30 }
  0x78   : > { %709 = vmatprep.mubr.bf16.mxu0 %v2788_v2 }
  0x7a   : > { %883 = vmatmul.mubr.bf16.gmra.mrb[32].mxu1 %v2943_v29 }
  0x7b   : > { %892 = vmatprep.mubr.bf16.mxu1 %v2788_v2 }
  0x7f   : > { %710 = vmatmul.mubr.bf16.gmra.mrb[40].mxu0 %v2953_v31 }
  0x80   : > { %719 = vmatprep.mubr.bf16.mxu0 %v2788_v2 }
  0x82   : > { %893 = vmatmul.mubr.bf16.gmra.mrb[36].mxu1 %v2948_v30 }
  0x83   : > { %902 = vmatprep.mubr.bf16.mxu1 %v2788_v2 }
  0x87   : > { %720 = vmatmul.mubr.bf16.gmra.mrb[44].mxu0 %v2961_v33 }
  0x88   : > { %729 = vmatprep.mubr.bf16.mxu0 %v2788_v2 }
  0x8a   : > { %903 = vmatmul.mubr.bf16.gmra.mrb[40].mxu1 %v2953_v31 }
  0x8b   : > { %912 = vmatprep.mubr.bf16.mxu1 %v2788_v2 }
  0x8f   : > { %730 = vmatmul.mubr.bf16.gmra.mrb[48].mxu0 %v2972_v36 }
  0x90   : > { %739 = vmatprep.mubr.bf16.mxu0 %v2788_v2 }
  0x92   : > { %913 = vmatmul.mubr.bf16.gmra.mrb[44].mxu1 %v2961_v33 }
  0x93   : > { %922 = vmatprep.mubr.bf16.mxu1 %v2788_v2 }
  0x97   : > { %740 = vmatmul.mubr.bf16.gmra.mrb[52].mxu0 %v2980_v38 }
  0x98   : > { %749 = vmatprep.mubr.bf16.mxu0 %v2788_v2 }
  0x9a   : > { %923 = vmatmul.mubr.bf16.gmra.mrb[48].mxu1 %v2972_v36 }
  0x9b   : > { %932 = vmatprep.mubr.bf16.mxu1 %v2788_v2 }
  0x9f   : > { %750 = vmatmul.mubr.bf16.gmra.mrb[56].mxu0 %v2985_v39 }
  0xa0   : > { %759 = vmatprep.mubr.bf16.mxu0 %v2788_v2 }
  0xa2   : > { %933 = vmatmul.mubr.bf16.gmra.mrb[52].mxu1 %v2980_v38 }
  0xa3   : > { %942 = vmatprep.mubr.bf16.mxu1 %v2788_v2 }
  0xa7   : > { %760 = vmatmul.mubr.bf16.gmra.mrb[60].mxu0 %v2990_v40 }
  0xaa   : > { %943 = vmatmul.mubr.bf16.gmra.mrb[56].mxu1 %v2985_v39  ;;  %v2761_v39 = vld [vmem:[%s3665_s2 + $0x94] ss:$12 sps:$4 sm:$0xff]  }
  0xab   : > { %952 = vmatprep.mubr.bf16.mxu1 %v2788_v2 }
  0xb2   : > { %953 = vmatmul.mubr.bf16.gmra.mrb[60].mxu1 %v2990_v40 }
 0x102   : > { %v611_v62 = vpop.f32.mrb[0].mxu0 }
 0x103   : > { %v967_v63 = vadd.f32 %v3054_v61, %v611_v62  ;;  %v3057_v0 = vpop.f32.mrb[1].mxu0 }
 0x104   : > { %v615_v4 = vpop.f32.mrb[2].mxu0 }
 0x105   : > { %v968_v5 = vadd.f32 %v3054_v61, %v615_v4  ;;  %v3068_v6 = vpop.f32.mrb[3].mxu0  ;;  %v999_v7 = vmax.f32 %v967_v63, 0.0 }
 0x107   : > { %v1000_v8 = vmax.f32 %v968_v5, 0.0 }
 0x109   : > { %v1031_v10 = vpack.c.bf16 %v1000_v8, %v999_v7 }
 0x10a   : > { %v621_v11 = vpop.f32.mrb[4].mxu0 }
 0x10b   : > { %v969_v12 = vadd.f32 %v3054_v61, %v621_v11  ;;  %v3074_v13 = vpop.f32.mrb[5].mxu0  ;;  %2498 = vmatprep.mubr.bf16.mxu0 %v1031_v10 }
 0x10c   : > { %v625_v15 = vpop.f32.mrb[6].mxu0 }
 0x10d   : > { %v970_v16 = vadd.f32 %v3054_v61, %v625_v15  ;;  %v3082_v17 = vpop.f32.mrb[7].mxu0  ;;  %v1001_v18 = vmax.f32 %v969_v12, 0.0 }
 0x10f   : > { %v1002_v19 = vmax.f32 %v970_v16, 0.0 }
 0x111   : > { %v1032_v21 = vpack.c.bf16 %v1002_v19, %v1001_v18 }
 0x112   : > { %v631_v22 = vpop.f32.mrb[8].mxu0 }
 0x113   : > { %v971_v23 = vadd.f32 %v3054_v61, %v631_v22  ;;  %v3088_v24 = vpop.f32.mrb[9].mxu0  ;;  %2499 = vmatmul.mubr.bf16.vlgmr.msra.gmra.mrb[64].mxu0 %v1032_v21 }
 0x114   : > { %v635_v32 = vpop.f32.mrb[10].mxu0 }
 0x115   : > { %v972_v34 = vadd.f32 %v3054_v61, %v635_v32  ;;  %v3093_v35 = vpop.f32.mrb[11].mxu0  ;;  %v1003_v37 = vmax.f32 %v971_v23, 0.0 }
 0x117   : > { %v1004_v41 = vmax.f32 %v972_v34, 0.0 }
 0x119   : > { %v1033_v42 = vpack.c.bf16 %v1004_v41, %v1003_v37 }
 0x11a   : > { %v641_v43 = vpop.f32.mrb[12].mxu0 }
 0x11b   : > { %v973_v44 = vadd.f32 %v3054_v61, %v641_v43  ;;  %v3096_v45 = vpop.f32.mrb[13].mxu0  ;;  %2502 = vmatprep.mubr.bf16.mxu0 %v1033_v42 }
 0x11c   : > { %v645_v25 = vpop.f32.mrb[14].mxu0 }
 0x11d   : > { %v974_v46 = vadd.f32 %v3054_v61, %v645_v25  ;;  %v3101_v47 = vpop.f32.mrb[15].mxu0  ;;  %v1005_v48 = vmax.f32 %v973_v44, 0.0 }
 0x11f   : > { %v1006_v49 = vmax.f32 %v974_v46, 0.0 }
 0x121   : > { %v1034_v50 = vpack.c.bf16 %v1006_v49, %v1005_v48 }
 0x122   : > { %v651_v51 = vpop.f32.mrb[16].mxu0 }
 0x123   : > { %v975_v52 = vadd.f32 %v3054_v61, %v651_v51  ;;  %v3104_v53 = vpop.f32.mrb[17].mxu0  ;;  %2503 = vmatmul.mubr.bf16.gmra.mrb[68].mxu0 %v1034_v50 }
 0x124   : > { %v655_v54 = vpop.f32.mrb[18].mxu0 }
 0x125   : > { %v976_v26 = vadd.f32 %v3054_v61, %v655_v54  ;;  %v3109_v55 = vpop.f32.mrb[19].mxu0  ;;  %v1007_v56 = vmax.f32 %v975_v52, 0.0 }
 0x127   : > { %v1008_v57 = vmax.f32 %v976_v26, 0.0 }
 0x129   : > { %v1035_v59 = vpack.c.bf16 %v1008_v57, %v1007_v56 }
 0x12a   : > { %v661_v62 = vpop.f32.mrb[20].mxu0 }
 0x12b   : > { %v977_v63 = vadd.f32 %v3054_v61, %v661_v62  ;;  %v3112_v1 = vpop.f32.mrb[21].mxu0  ;;  %2506 = vmatprep.mubr.bf16.mxu0 %v1035_v59 }
 0x12c   : > { %v665_v3 = vpop.f32.mrb[22].mxu0 }
 0x12d   : > { %v978_v27 = vadd.f32 %v3054_v61, %v665_v3  ;;  %v3117_v4 = vpop.f32.mrb[23].mxu0  ;;  %v1009_v5 = vmax.f32 %v977_v63, 0.0 }
 0x12f   : > { %v1010_v7 = vmax.f32 %v978_v27, 0.0 }
 0x131   : > { %v1036_v8 = vpack.c.bf16 %v1010_v7, %v1009_v5 }
 0x132   : > { %v671_v9 = vpop.f32.mrb[24].mxu0 }
 0x133   : > { %v979_v10 = vadd.f32 %v3054_v61, %v671_v9  ;;  %v3120_v11 = vpop.f32.mrb[25].mxu0  ;;  %2507 = vmatmul.mubr.bf16.gmra.mrb[72].mxu0 %v1036_v8 }
 0x134   : > { %v675_v12 = vpop.f32.mrb[26].mxu0 }
 0x135   : > { %v980_v28 = vadd.f32 %v3054_v61, %v675_v12  ;;  %v3125_v14 = vpop.f32.mrb[27].mxu0  ;;  %v1011_v15 = vmax.f32 %v979_v10, 0.0 }
 0x137   : > { %v1012_v16 = vmax.f32 %v980_v28, 0.0 }
 0x139   : > { %v1037_v18 = vpack.c.bf16 %v1012_v16, %v1011_v15 }
 0x13a   : > { %v681_v19 = vpop.f32.mrb[28].mxu0 }
 0x13b   : > { %v981_v20 = vadd.f32 %v3054_v61, %v681_v19  ;;  %v3128_v21 = vpop.f32.mrb[29].mxu0  ;;  %2510 = vmatprep.mubr.bf16.mxu0 %v1037_v18 }
 0x13c   : > { %v685_v22 = vpop.f32.mrb[30].mxu0 }
 0x13d   : > { %v982_v29 = vadd.f32 %v3054_v61, %v685_v22  ;;  %v3133_v23 = vpop.f32.mrb[31].mxu0  ;;  %v1013_v32 = vmax.f32 %v981_v20, 0.0 }
 0x13f   : > { %v1014_v34 = vmax.f32 %v982_v29, 0.0 }
 0x141   : > { %v1038_v37 = vpack.c.bf16 %v1014_v34, %v1013_v32 }
 0x142   : > { %v691_v41 = vpop.f32.mrb[32].mxu0 }
 0x143   : > { %v983_v42 = vadd.f32 %v3054_v61, %v691_v41  ;;  %v3136_v43 = vpop.f32.mrb[33].mxu0  ;;  %2511 = vmatmul.mubr.bf16.gmra.mrb[76].mxu0 %v1038_v37  ;;  %v2760_v41 = vld [vmem:[%s3665_s2 + $0x7c] ss:$12 sps:$4 sm:$0xff]  }
 0x144   : > { %v695_v44 = vpop.f32.mrb[34].mxu0  ;;  %2540 = vmatprep.subr.bf16.mxu1 %v2760_v41 }
 0x145   : > { %v984_v30 = vadd.f32 %v3054_v61, %v695_v44  ;;  %v3141_v25 = vpop.f32.mrb[35].mxu0  ;;  %v1015_v46 = vmax.f32 %v983_v42, 0.0  ;;  %2541 = vmatpush3.bf16.msra.mxu1 %v2760_v41  ;;  %v2763_v41 = vld [vmem:[%s3665_s2 + $0x8] ss:$12 sps:$4 sm:$0xff]  }
 0x146   : > { %2542 = vmatprep.subr.bf16.mxu1 %v2761_v39  ;;  %2578 = vmatprep.subr.bf16.mxu0 %v2763_v41 }
 0x147   : > { %v1016_v48 = vmax.f32 %v984_v30, 0.0  ;;  %2579 = vmatpush3.bf16.msra.mxu0 %v2763_v41 }
 0x149   : > { %v1039_v49 = vpack.c.bf16 %v1016_v48, %v1015_v46  ;;  %2543 = vmatpush3.bf16.msra.mxu1 %v2761_v39 }
 0x14a   : > { %v701_v50 = vpop.f32.mrb[36].mxu0 }
 0x14b   : > { %v985_v51 = vadd.f32 %v3054_v61, %v701_v50  ;;  %v3144_v52 = vpop.f32.mrb[37].mxu0  ;;  %2514 = vmatprep.mubr.bf16.mxu0 %v1039_v49 }
 0x14c   : > { %v705_v54 = vpop.f32.mrb[38].mxu0 }
 0x14d   : > { %v986_v31 = vadd.f32 %v3054_v61, %v705_v54  ;;  %v3149_v26 = vpop.f32.mrb[39].mxu0  ;;  %v1017_v56 = vmax.f32 %v985_v51, 0.0  ;;  %v2762_v54 = vld [vmem:[%s3665_s2 + $0xac] ss:$12 sps:$4 sm:$0xff]  }
 0x14e   : > { %2544 = vmatprep.subr.bf16.mxu1 %v2762_v54 }
 0x14f   : > { %v1018_v57 = vmax.f32 %v986_v31, 0.0  ;;  %2545 = vmatpush3.bf16.msra.mxu1 %v2762_v54  ;;  %v2765_v54 = vld [vmem:[%s3665_s2 + $0x38] ss:$12 sps:$4 sm:$0xff]  }
 0x151   : > { %v1040_v59 = vpack.c.bf16 %v1018_v57, %v1017_v56 }
 0x152   : > { %v711_v62 = vpop.f32.mrb[40].mxu0 }
 0x153   : > { %v987_v63 = vadd.f32 %v3054_v61, %v711_v62  ;;  %v3152_v3 = vpop.f32.mrb[41].mxu0  ;;  %2515 = vmatmul.mubr.bf16.gmra.mrb[80].mxu0 %v1040_v59 }
 0x154   : > { %v715_v27 = vpop.f32.mrb[42].mxu0 }
 0x155   : > { %v988_v33 = vadd.f32 %v3054_v61, %v715_v27  ;;  %v3157_v5 = vpop.f32.mrb[43].mxu0  ;;  %v1019_v7 = vmax.f32 %v987_v63, 0.0 }
 0x157   : > { %v1020_v8 = vmax.f32 %v988_v33, 0.0 }
 0x159   : > { %v1041_v9 = vpack.c.bf16 %v1020_v8, %v1019_v7 }
 0x15a   : > { %v721_v10 = vpop.f32.mrb[44].mxu0 }
 0x15b   : > { %v989_v12 = vadd.f32 %v3054_v61, %v721_v10  ;;  %v3160_v28 = vpop.f32.mrb[45].mxu0  ;;  %2518 = vmatprep.mubr.bf16.mxu0 %v1041_v9 }
 0x15c   : > { %v725_v15 = vpop.f32.mrb[46].mxu0 }
 0x15d   : > { %v990_v36 = vadd.f32 %v3054_v61, %v725_v15  ;;  %v3165_v16 = vpop.f32.mrb[47].mxu0  ;;  %v1021_v18 = vmax.f32 %v989_v12, 0.0 }
 0x15f   : > { %v1022_v19 = vmax.f32 %v990_v36, 0.0 }
 0x161   : > { %v1042_v20 = vpack.c.bf16 %v1022_v19, %v1021_v18 }
 0x162   : > { %v731_v22 = vpop.f32.mrb[48].mxu0 }
 0x163   : > { %v991_v29 = vadd.f32 %v3054_v61, %v731_v22  ;;  %v3168_v32 = vpop.f32.mrb[49].mxu0  ;;  %2519 = vmatmul.mubr.bf16.gmra.mrb[84].mxu0 %v1042_v20 }
 0x164   : > { %v735_v34 = vpop.f32.mrb[50].mxu0 }
 0x165   : > { %v992_v38 = vadd.f32 %v3054_v61, %v735_v34  ;;  %v3173_v37 = vpop.f32.mrb[51].mxu0  ;;  %v1023_v42 = vmax.f32 %v991_v29, 0.0  ;;  %v1274_v34 = vsub.s32 1, %v3043_v58 }
 0x167   : > { %v1024_v44 = vmax.f32 %v992_v38, 0.0  ;;  %v3204_v38 = vpop.f32.mrb[0].mxu1 }
 0x169   : > { %v1043_v30 = vpack.c.bf16 %v1024_v44, %v1023_v42  ;;  %v2764_v42 = vld [vmem:[%s3665_s2 + $0x20] ss:$12 sps:$4 sm:$0xff]   ;;  %v3212_v44 = vpop.f32.mrb[1].mxu1 }
 0x16a   : > { %v741_v46 = vpop.f32.mrb[52].mxu0  ;;  %2580 = vmatprep.subr.bf16.mxu0 %v2764_v42 }
 0x16b   : > { %v993_v2 = vadd.f32 %v3054_v61, %v741_v46  ;;  %v3182_v48 = vpop.f32.mrb[53].mxu0  ;;  %2522 = vmatprep.mubr.bf16.mxu0 %v1043_v30  ;;  %v3217_v30 = vpop.f32.mrb[2].mxu1  ;;  %2581 = vmatpush3.bf16.msra.mxu0 %v2764_v42  ;;  %v2767_v42 = vld [vmem:[%s3665_s2 + $0x68] ss:$12 sps:$4 sm:$0xff]  }
 0x16c   : > { %v745_v49 = vpop.f32.mrb[54].mxu0  ;;  %v3219_v46 = vpop.f32.mrb[3].mxu1  ;;  %2582 = vmatprep.subr.bf16.mxu0 %v2765_v54 }
 0x16d   : > { %v994_v50 = vadd.f32 %v3054_v61, %v745_v49  ;;  %v3186_v51 = vpop.f32.mrb[55].mxu0  ;;  %v1025_v31 = vmax.f32 %v993_v2, 0.0 }
 0x16f   : > { %v1026_v56 = vmax.f32 %v994_v50, 0.0  ;;  %v3222_v50 = vpop.f32.mrb[4].mxu1  ;;  %2583 = vmatpush3.bf16.msra.mxu0 %v2765_v54 }
 0x171   : > { %v1044_v57 = vpack.c.bf16 %v1026_v56, %v1025_v31 }
 0x172   : > { %v751_v59 = vpop.f32.mrb[56].mxu0 }
 0x173   : > { %v995_v62 = vadd.f32 %v3054_v61, %v751_v59  ;;  %v3192_v40 = vpop.f32.mrb[57].mxu0  ;;  %2523 = vmatmul.mubr.bf16.gmra.mrb[88].mxu0 %v1044_v57  ;;  %v3228_v57 = vpop.f32.mrb[5].mxu1 }
 0x174   : > { %v755_v63 = vpop.f32.mrb[58].mxu0 }
 0x175   : > { %v996_v27 = vadd.f32 %v3054_v61, %v755_v63  ;;  %v3195_v33 = vpop.f32.mrb[59].mxu0  ;;  %v1027_v7 = vmax.f32 %v995_v62, 0.0 }
 0x177   : > { %v1028_v8 = vmax.f32 %v996_v27, 0.0  ;;  %v3232_v27 = vpop.f32.mrb[6].mxu1 }
 0x179   : > { %v1045_v9 = vpack.c.bf16 %v1028_v8, %v1027_v7  ;;  %v3236_v8 = vpop.f32.mrb[7].mxu1 }
 0x17a   : > { %v761_v10 = vpop.f32.mrb[60].mxu0 }
 0x17b   : > { %v997_v12 = vadd.f32 %v3054_v61, %v761_v10  ;;  %v3198_v15 = vpop.f32.mrb[61].mxu0  ;;  %2526 = vmatprep.mubr.bf16.mxu0 %v1045_v9  ;;  %v2766_v10 = vld [vmem:[%s3665_s2 + $0x50] ss:$12 sps:$4 sm:$0xff]  }
 0x17c   : > { %v765_v36 = vpop.f32.mrb[62].mxu0  ;;  %2584 = vmatprep.subr.bf16.mxu0 %v2766_v10 }
 0x17d   : > { %v998_v18 = vadd.f32 %v3054_v61, %v765_v36  ;;  %v3201_v19 = vpop.f32.mrb[63].mxu0  ;;  %v1029_v20 = vmax.f32 %v997_v12, 0.0  ;;  %v3215_v61 = vrot.slane %v3050_v60, %v1274_v34  ;;  %2585 = vmatpush3.bf16.msra.mxu0 %v2766_v10 }
 0x17e   : > { %2586 = vmatprep.subr.bf16.mxu0 %v2767_v42 }
 0x17f   : > { %v1030_v22 = vmax.f32 %v998_v18, 0.0 }
 0x181   : > { %v1046_v29 = vpack.c.bf16 %v1030_v22, %v1029_v20  ;;  %2587 = vmatpush3.bf16.msra.mxu0 %v2767_v42 }
 0x183   : > { %2527 = vmatmul.mubr.bf16.gmra.mrb[92].mxu0 %v1046_v29 }
 0x1e6   : > { %v2500_v39 = vpop.f32.mrb[64].mxu0 }
 0x1e7   : > { %v1154_v2 = vadd.f32 %v2500_v39, %v3074_v13  ;;  %v1145_v49 = vpop.f32.mrb[65].mxu0 }
 0x1e8   : > { %v1146_v31 = vadd.f32 %v1145_v49, %v3057_v0  ;;  %v2501_v56 = vpop.f32.mrb[66].mxu0  ;;  %v3239_v0 = vpop.f32.mrb[8].mxu1 }
 0x1e9   : > { %v1278_v59 = vadd.f32 %v3215_v61, %v1154_v2  ;;  %v1157_v62 = vadd.f32 %v2501_v56, %v3082_v17  ;;  %v1148_v63 = vpop.f32.mrb[67].mxu0  ;;  %v3245_v12 = vpop.f32.mrb[9].mxu1 }
 0x1ea   : > { %v1276_v13 = vadd.f32 %v3215_v61, %v1146_v31  ;;  %v1149_v7 = vadd.f32 %v1148_v63, %v3068_v6  ;;  %3670 = vst [vmem:[#allocation2_spill] sm:$0xff] %v3245_v12  ;;  %v3247_v20 = vpop.f32.mrb[10].mxu1 }
 0x1eb   : > { %v1279_v9 = vadd.f32 %v3215_v61, %v1157_v62  ;;  %v1310_v36 = vmax.f32 %v1278_v59, 0.0  ;;  %v3249_v29 = vpop.f32.mrb[11].mxu1 }
 0x1ec   : > { %v1277_v17 = vadd.f32 %v3215_v61, %v1149_v7  ;;  %v1308_v6 = vmax.f32 %v1276_v13, 0.0  ;;  %3671 = vst [vmem:[#allocation3_spill] sm:$0xff] %v3249_v29  ;;  %v3251_v41 = vpop.f32.mrb[12].mxu1 }
 0x1ed   : > { %v1311_v18 = vmax.f32 %v1279_v9, 0.0  ;;  %v3256_v2 = vpop.f32.mrb[13].mxu1 }
 0x1ee   : > { %v1309_v22 = vmax.f32 %v1277_v17, 0.0  ;;  %3672 = vst [vmem:[#allocation4_spill] sm:$0xff] %v3256_v2  ;;  %v3258_v49 = vpop.f32.mrb[14].mxu1 }
 0x1ef   : > { %v1341_v34 = vpack.c.bf16 %v1311_v18, %v1310_v36  ;;  %v3260_v31 = vpop.f32.mrb[15].mxu1 }
 0x1f0   : > { %v1340_v39 = vpack.c.bf16 %v1309_v22, %v1308_v6  ;;  %3673 = vst [vmem:[#allocation5_spill] sm:$0xff] %v3260_v31  ;;  %v3262_v56 = vpop.f32.mrb[16].mxu1 }
 0x1f1   : > { %v3264_v54 = vpop.f32.mrb[17].mxu1 }
 0x1f2   : > { %2546 = vmatprep.mubr.bf16.mxu1 %v1340_v39  ;;  %3674 = vst [vmem:[#allocation6_spill] sm:$0xff] %v3264_v54  ;;  %v3266_v59 = vpop.f32.mrb[18].mxu1 }
 0x1f3   : > { %2547 = vmatmul.mubr.bf16.vlgmr.msra.gmra.mrb[64].mxu1 %v1341_v34  ;;  %v3268_v63 = vpop.f32.mrb[19].mxu1 }
 0x1f4   : > { %3675 = vst [vmem:[#allocation7_spill] sm:$0xff] %v3268_v63  ;;  %v3271_v9 = vpop.f32.mrb[20].mxu1 }
 0x1f5   : > { %v3274_v36 = vpop.f32.mrb[21].mxu1 }
 0x1f6   : > { %v2504_v62 = vpop.f32.mrb[68].mxu0  ;;  %3676 = vst [vmem:[#allocation8_spill] sm:$0xff] %v3274_v36  ;;  %v3278_v34 = vpop.f32.mrb[22].mxu1 }
 0x1f7   : > { %v1170_v13 = vadd.f32 %v2504_v62, %v3096_v45  ;;  %v1161_v7 = vpop.f32.mrb[69].mxu0  ;;  %v3282_v45 = vpop.f32.mrb[23].mxu1 }
 0x1f8   : > { %v1162_v17 = vadd.f32 %v1161_v7, %v3088_v24  ;;  %v2505_v10 = vpop.f32.mrb[70].mxu0  ;;  %3677 = vst [vmem:[#allocation9_spill] sm:$0xff] %v3282_v45  ;;  %v3285_v63 = vpop.f32.mrb[24].mxu1 }
 0x1f9   : > { %v1282_v18 = vadd.f32 %v3215_v61, %v1170_v13  ;;  %v1173_v6 = vadd.f32 %v2505_v10, %v3101_v47  ;;  %v1164_v22 = vpop.f32.mrb[71].mxu0  ;;  %v3288_v7 = vpop.f32.mrb[25].mxu1 }
 0x1fa   : > { %v1280_v39 = vadd.f32 %v3215_v61, %v1162_v17  ;;  %v1165_v42 = vadd.f32 %v1164_v22, %v3093_v35  ;;  %3678 = vst [vmem:[#allocation10_spill] sm:$0xff] %v3288_v7  ;;  %v3290_v47 = vpop.f32.mrb[26].mxu1 }
 0x1fb   : > { %v1283_v62 = vadd.f32 %v3215_v61, %v1173_v6  ;;  %v1314_v13 = vmax.f32 %v1282_v18, 0.0  ;;  %v3292_v29 = vpop.f32.mrb[27].mxu1 }
 0x1fc   : > { %v1281_v24 = vadd.f32 %v3215_v61, %v1165_v42  ;;  %v1312_v10 = vmax.f32 %v1280_v39, 0.0  ;;  %3679 = vst [vmem:[#allocation11_spill] sm:$0xff] %v3292_v29  ;;  %v3294_v35 = vpop.f32.mrb[28].mxu1 }
 0x1fd   : > { %v1315_v54 = vmax.f32 %v1283_v62, 0.0  ;;  %v3296_v45 = vpop.f32.mrb[29].mxu1 }
 0x1fe   : > { %v1313_v36 = vmax.f32 %v1281_v24, 0.0  ;;  %3680 = vst [vmem:[#allocation12_spill] sm:$0xff] %v3296_v45  ;;  %v3298_v6 = vpop.f32.mrb[30].mxu1 }
 0x1ff   : > { %v1343_v17 = vpack.c.bf16 %v1315_v54, %v1314_v13  ;;  %v3300_v42 = vpop.f32.mrb[31].mxu1 }
 0x200   : > { %v1342_v22 = vpack.c.bf16 %v1313_v36, %v1312_v10  ;;  %3681 = vst [vmem:[#allocation13_spill] sm:$0xff] %v3300_v42  ;;  %v3302_v62 = vpop.f32.mrb[32].mxu1 }
 0x201   : > { %v3305_v7 = vpop.f32.mrb[33].mxu1 }
 0x202   : > { %2550 = vmatprep.mubr.bf16.mxu1 %v1342_v22  ;;  %3682 = vst [vmem:[#allocation14_spill] sm:$0xff] %v3305_v7  ;;  %v3308_v36 = vpop.f32.mrb[34].mxu1 }
 0x203   : > { %2551 = vmatmul.mubr.bf16.gmra.mrb[68].mxu1 %v1343_v17  ;;  %v3312_v42 = vpop.f32.mrb[35].mxu1 }
 0x204   : > { %3683 = vst [vmem:[#allocation15_spill] sm:$0xff] %v3312_v42  ;;  %v3318_v12 = vpop.f32.mrb[36].mxu1 }
 0x205   : > { %v3320_v2 = vpop.f32.mrb[37].mxu1 }
 0x206   : > { %v2508_v18 = vpop.f32.mrb[72].mxu0  ;;  %3684 = vst [vmem:[#allocation16_spill] sm:$0xff] %v3320_v2 }
 0x207   : > { %v1186_v39 = vadd.f32 %v2508_v18, %v3112_v1  ;;  %v1177_v24 = vpop.f32.mrb[73].mxu0 }
 0x208   : > { %v1178_v54 = vadd.f32 %v1177_v24, %v3104_v53  ;;  %v2509_v13 = vpop.f32.mrb[74].mxu0 }
 0x209   : > { %v1286_v10 = vadd.f32 %v3215_v61, %v1186_v39  ;;  %v1189_v22 = vadd.f32 %v2509_v13, %v3117_v4  ;;  %v1180_v29 = vpop.f32.mrb[75].mxu0  ;;  %v3322_v13 = vpop.f32.mrb[38].mxu1 }
 0x20a   : > { %v1284_v17 = vadd.f32 %v3215_v61, %v1178_v54  ;;  %v1181_v45 = vadd.f32 %v1180_v29, %v3109_v55  ;;  %v3324_v42 = vpop.f32.mrb[39].mxu1 }
 0x20b   : > { %v1287_v1 = vadd.f32 %v3215_v61, %v1189_v22  ;;  %v1318_v7 = vmax.f32 %v1286_v10, 0.0  ;;  %3685 = vst [vmem:[#allocation17_spill] sm:$0xff] %v3324_v42  ;;  %v3326_v29 = vpop.f32.mrb[40].mxu1 }
 0x20c   : > { %v1285_v18 = vadd.f32 %v3215_v61, %v1181_v45  ;;  %v1316_v24 = vmax.f32 %v1284_v17, 0.0  ;;  %v3329_v10 = vpop.f32.mrb[41].mxu1 }
 0x20d   : > { %v1319_v53 = vmax.f32 %v1287_v1, 0.0  ;;  %3686 = vst [vmem:[#allocation18_spill] sm:$0xff] %v3329_v10  ;;  %v3332_v17 = vpop.f32.mrb[42].mxu1 }
 0x20e   : > { %v1317_v31 = vmax.f32 %v1285_v18, 0.0 }
 0x20f   : > { %v1345_v39 = vpack.c.bf16 %v1319_v53, %v1318_v7  ;;  %v3336_v53 = vpop.f32.mrb[43].mxu1 }
 0x210   : > { %v1344_v4 = vpack.c.bf16 %v1317_v31, %v1316_v24  ;;  %3687 = vst [vmem:[#allocation19_spill] sm:$0xff] %v3336_v53  ;;  %v3342_v42 = vpop.f32.mrb[44].mxu1 }
 0x211   : > { %v3344_v2 = vpop.f32.mrb[45].mxu1 }
 0x212   : > { %2554 = vmatprep.mubr.bf16.mxu1 %v1344_v4  ;;  %3688 = vst [vmem:[#allocation20_spill] sm:$0xff] %v3344_v2 }
 0x213   : > { %2555 = vmatmul.mubr.bf16.gmra.mrb[72].mxu1 %v1345_v39 }
 0x216   : > { %v2512_v55 = vpop.f32.mrb[76].mxu0 }
 0x217   : > { %v1202_v45 = vadd.f32 %v2512_v55, %v3128_v21  ;;  %v1193_v54 = vpop.f32.mrb[77].mxu0 }
 0x218   : > { %v1194_v22 = vadd.f32 %v1193_v54, %v3120_v11  ;;  %v2513_v7 = vpop.f32.mrb[78].mxu0 }
 0x219   : > { %v1290_v31 = vadd.f32 %v3215_v61, %v1202_v45  ;;  %v1205_v1 = vadd.f32 %v2513_v7, %v3133_v23  ;;  %v1196_v18 = vpop.f32.mrb[79].mxu0  ;;  %v3346_v7 = vpop.f32.mrb[46].mxu1 }
 0x21a   : > { %v1288_v24 = vadd.f32 %v3215_v61, %v1194_v22  ;;  %v1197_v39 = vadd.f32 %v1196_v18, %v3125_v14  ;;  %v3348_v53 = vpop.f32.mrb[47].mxu1 }
 0x21b   : > { %v1291_v21 = vadd.f32 %v3215_v61, %v1205_v1  ;;  %v1322_v55 = vmax.f32 %v1290_v31, 0.0  ;;  %3689 = vst [vmem:[#allocation21_spill] sm:$0xff] %v3348_v53  ;;  %v3350_v22 = vpop.f32.mrb[48].mxu1 }
 0x21c   : > { %v1289_v4 = vadd.f32 %v3215_v61, %v1197_v39  ;;  %v1320_v54 = vmax.f32 %v1288_v24, 0.0  ;;  %v3353_v18 = vpop.f32.mrb[49].mxu1 }
 0x21d   : > { %v1323_v11 = vmax.f32 %v1291_v21, 0.0  ;;  %3690 = vst [vmem:[#allocation22_spill] sm:$0xff] %v3353_v18  ;;  %v3356_v21 = vpop.f32.mrb[50].mxu1 }
 0x21e   : > { %v1321_v10 = vmax.f32 %v1289_v4, 0.0 }
 0x21f   : > { %v1347_v45 = vpack.c.bf16 %v1323_v11, %v1322_v55  ;;  %v3360_v11 = vpop.f32.mrb[51].mxu1 }
 0x220   : > { %v1346_v23 = vpack.c.bf16 %v1321_v10, %v1320_v54  ;;  %3691 = vst [vmem:[#allocation23_spill] sm:$0xff] %v3360_v11  ;;  %v3366_v53 = vpop.f32.mrb[52].mxu1 }
 0x221   : > { %v3368_v2 = vpop.f32.mrb[53].mxu1 }
 0x222   : > { %2558 = vmatprep.mubr.bf16.mxu1 %v1346_v23  ;;  %3692 = vst [vmem:[#allocation24_spill] sm:$0xff] %v3368_v2 }
 0x223   : > { %2559 = vmatmul.mubr.bf16.gmra.mrb[76].mxu1 %v1347_v45 }
 0x226   : > { %v2516_v14 = vpop.f32.mrb[80].mxu0 }
 0x227   : > { %v1218_v31 = vadd.f32 %v2516_v14, %v3144_v52  ;;  %v1209_v1 = vpop.f32.mrb[81].mxu0 }
 0x228   : > { %v1210_v24 = vadd.f32 %v1209_v1, %v3136_v43  ;;  %v2517_v39 = vpop.f32.mrb[82].mxu0 }
 0x229   : > { %v1294_v10 = vadd.f32 %v3215_v61, %v1218_v31  ;;  %v1221_v4 = vadd.f32 %v2517_v39, %v3149_v26  ;;  %v1212_v55 = vpop.f32.mrb[83].mxu0  ;;  %v3370_v39 = vpop.f32.mrb[54].mxu1 }
 0x22a   : > { %v1292_v54 = vadd.f32 %v3215_v61, %v1210_v24  ;;  %v1213_v45 = vadd.f32 %v1212_v55, %v3141_v25  ;;  %v3372_v11 = vpop.f32.mrb[55].mxu1 }
 0x22b   : > { %v1295_v52 = vadd.f32 %v3215_v61, %v1221_v4  ;;  %v1326_v14 = vmax.f32 %v1294_v10, 0.0  ;;  %3693 = vst [vmem:[#allocation25_spill] sm:$0xff] %v3372_v11  ;;  %v3374_v24 = vpop.f32.mrb[56].mxu1 }
 0x22c   : > { %v1293_v23 = vadd.f32 %v3215_v61, %v1213_v45  ;;  %v1324_v1 = vmax.f32 %v1292_v54, 0.0  ;;  %v3377_v55 = vpop.f32.mrb[57].mxu1 }
 0x22d   : > { %v1327_v43 = vmax.f32 %v1295_v52, 0.0  ;;  %3694 = vst [vmem:[#allocation26_spill] sm:$0xff] %v3377_v55  ;;  %v3380_v52 = vpop.f32.mrb[58].mxu1 }
 0x22e   : > { %v1325_v18 = vmax.f32 %v1293_v23, 0.0 }
 0x22f   : > { %v1349_v31 = vpack.c.bf16 %v1327_v43, %v1326_v14  ;;  %v3384_v43 = vpop.f32.mrb[59].mxu1 }
 0x230   : > { %v1348_v26 = vpack.c.bf16 %v1325_v18, %v1324_v1  ;;  %3695 = vst [vmem:[#allocation27_spill] sm:$0xff] %v3384_v43  ;;  %v3390_v11 = vpop.f32.mrb[60].mxu1 }
 0x231   : > { %v3392_v2 = vpop.f32.mrb[61].mxu1 }
 0x232   : > { %2562 = vmatprep.mubr.bf16.mxu1 %v1348_v26 }
 0x233   : > { %2563 = vmatmul.mubr.bf16.gmra.mrb[80].mxu1 %v1349_v31 }
 0x236   : > { %v2520_v25 = vpop.f32.mrb[84].mxu0 }
 0x237   : > { %v1234_v10 = vadd.f32 %v2520_v25, %v3160_v28  ;;  %v1225_v4 = vpop.f32.mrb[85].mxu0 }
 0x238   : > { %v1226_v54 = vadd.f32 %v1225_v4, %v3152_v3  ;;  %v2521_v45 = vpop.f32.mrb[86].mxu0 }
 0x239   : > { %v1298_v18 = vadd.f32 %v3215_v61, %v1234_v10  ;;  %v1237_v23 = vadd.f32 %v2521_v45, %v3165_v16  ;;  %v1228_v14 = vpop.f32.mrb[87].mxu0  ;;  %v3394_v45 = vpop.f32.mrb[62].mxu1 }
 0x23a   : > { %v1296_v1 = vadd.f32 %v3215_v61, %v1226_v54  ;;  %v1229_v31 = vadd.f32 %v1228_v14, %v3157_v5  ;;  %v3396_v43 = vpop.f32.mrb[63].mxu1  ;;  %v2768_v5 = vld [vmem:[%s3665_s2 + $0x80] ss:$12 sps:$4 sm:$0xff]  }
 0x23b   : > { %v1299_v28 = vadd.f32 %v3215_v61, %v1237_v23  ;;  %v1330_v25 = vmax.f32 %v1298_v18, 0.0  ;;  %2588 = vmatprep.subr.bf16.mxu0 %v2768_v5 }
 0x23c   : > { %v1297_v26 = vadd.f32 %v3215_v61, %v1229_v31  ;;  %v1328_v4 = vmax.f32 %v1296_v1, 0.0  ;;  %2589 = vmatpush3.bf16.msra.mxu0 %v2768_v5 }
 0x23d   : > { %v1331_v3 = vmax.f32 %v1299_v28, 0.0 }
 0x23e   : > { %v1329_v55 = vmax.f32 %v1297_v26, 0.0  ;;  %v2769_v26 = vld [vmem:[%s3665_s2 + $0x98] ss:$12 sps:$4 sm:$0xff]  }
 0x23f   : > { %v1351_v10 = vpack.c.bf16 %v1331_v3, %v1330_v25  ;;  %2590 = vmatprep.subr.bf16.mxu0 %v2769_v26 }
 0x240   : > { %v1350_v16 = vpack.c.bf16 %v1329_v55, %v1328_v4  ;;  %2591 = vmatpush3.bf16.msra.mxu0 %v2769_v26 }
 0x242   : > { %2566 = vmatprep.mubr.bf16.mxu1 %v1350_v16 }
 0x243   : > { %2567 = vmatmul.mubr.bf16.gmra.mrb[84].mxu1 %v1351_v10 }
 0x246   : > { %v2524_v54 = vpop.f32.mrb[88].mxu0 }
 0x247   : > { %v1250_v18 = vadd.f32 %v2524_v54, %v3182_v48  ;;  %v1241_v23 = vpop.f32.mrb[89].mxu0 }
 0x248   : > { %v1242_v14 = vadd.f32 %v1241_v23, %v3168_v32  ;;  %v2525_v1 = vpop.f32.mrb[90].mxu0 }
 0x249   : > { %v1302_v55 = vadd.f32 %v3215_v61, %v1250_v18  ;;  %v1253_v31 = vadd.f32 %v2525_v1, %v3186_v51  ;;  %v1244_v28 = vpop.f32.mrb[91].mxu0  ;;  %v2770_v51 = vld [vmem:[%s3665_s2 + $0xb0] ss:$12 sps:$4 sm:$0xff]  }
 0x24a   : > { %v1300_v25 = vadd.f32 %v3215_v61, %v1242_v14  ;;  %v1245_v3 = vadd.f32 %v1244_v28, %v3173_v37  ;;  %2592 = vmatprep.subr.bf16.mxu0 %v2770_v51 }
 0x24b   : > { %v1303_v48 = vadd.f32 %v3215_v61, %v1253_v31  ;;  %v1334_v4 = vmax.f32 %v1302_v55, 0.0  ;;  %2593 = vmatpush3.bf16.msra.mxu0 %v2770_v51 }
 0x24c   : > { %v1301_v32 = vadd.f32 %v3215_v61, %v1245_v3  ;;  %v1332_v16 = vmax.f32 %v1300_v25, 0.0 }
 0x24d   : > { %v1335_v10 = vmax.f32 %v1303_v48, 0.0 }
 0x24e   : > { %v1333_v5 = vmax.f32 %v1301_v32, 0.0 }
 0x24f   : > { %v1353_v54 = vpack.c.bf16 %v1335_v10, %v1334_v4 }
 0x250   : > { %v1352_v18 = vpack.c.bf16 %v1333_v5, %v1332_v16  ;;  %v1583_v5 = vsub.s32 2, %v3043_v58 }
 0x252   : > { %2570 = vmatprep.mubr.bf16.mxu1 %v1352_v18 }
 0x253   : > { %2571 = vmatmul.mubr.bf16.gmra.mrb[88].mxu1 %v1353_v54 }
 0x256   : > { %v2528_v37 = vpop.f32.mrb[92].mxu0 }
 0x257   : > { %v1266_v23 = vadd.f32 %v2528_v37, %v3198_v15  ;;  %v1257_v14 = vpop.f32.mrb[93].mxu0 }
 0x258   : > { %v1258_v1 = vadd.f32 %v1257_v14, %v3192_v40  ;;  %v2529_v55 = vpop.f32.mrb[94].mxu0 }
 0x259   : > { %v1306_v31 = vadd.f32 %v3215_v61, %v1266_v23  ;;  %v1269_v28 = vadd.f32 %v2529_v55, %v3201_v19  ;;  %v1260_v26 = vpop.f32.mrb[95].mxu0  ;;  %v2771_v19 = vld [vmem:[%s3667_s4] sm:$0xff]   ;;  %v2773_v23 = vld [vmem:[%s3667_s4 + $0x10] sm:$0xff]  }
 0x25a   : > { %v1304_v25 = vadd.f32 %v3215_v61, %v1258_v1  ;;  %v1261_v3 = vadd.f32 %v1260_v26, %v3195_v33  ;;  %v2772_v33 = vld [vmem:[%s3667_s4 + $0x8] sm:$0xff]   ;;  %2626 = vmatprep.subr.bf16.mxu1 %v2771_v19 }
 0x25b   : > { %v1307_v48 = vadd.f32 %v3215_v61, %v1269_v28  ;;  %v1338_v4 = vmax.f32 %v1306_v31, 0.0  ;;  %2627 = vmatpush3.bf16.msra.mxu1 %v2771_v19 }
 0x25c   : > { %v1305_v32 = vadd.f32 %v3215_v61, %v1261_v3  ;;  %v1336_v15 = vmax.f32 %v1304_v25, 0.0  ;;  %v3431_v61 = vrot.slane %v3050_v60, %v1583_v5  ;;  %2628 = vmatprep.subr.bf16.mxu1 %v2772_v33  ;;  %v2774_v25 = vld [vmem:[%s3667_s4 + $0x18] sm:$0xff]  }
 0x25d   : > { %v1339_v10 = vmax.f32 %v1307_v48, 0.0 }
 0x25e   : > { %v1337_v51 = vmax.f32 %v1305_v32, 0.0 }
 0x25f   : > { %v1355_v16 = vpack.c.bf16 %v1339_v10, %v1338_v4  ;;  %2629 = vmatpush3.bf16.msra.mxu1 %v2772_v33 }
 0x260   : > { %v1354_v40 = vpack.c.bf16 %v1337_v51, %v1336_v15  ;;  %2630 = vmatprep.subr.bf16.mxu1 %v2773_v23 }
 0x262   : > { %2574 = vmatprep.mubr.bf16.mxu1 %v1354_v40 }
 0x263   : > { %2575 = vmatmul.mubr.bf16.gmra.mrb[92].mxu1 %v1355_v16 }
 0x264   : > { %2631 = vmatpush3.bf16.msra.mxu1 %v2773_v23 }
 0x265   : > { %2632 = vmatprep.subr.bf16.mxu1 %v2774_v25 }
 0x268   : > { %2633 = vmatpush3.bf16.msra.mxu1 %v2774_v25 }
 0x2c6   : > { %v2548_v54 = vpop.f32.mrb[64].mxu1 }
 0x2c7   : > { %v1463_v18 = vadd.f32 %v2548_v54, %v3222_v50  ;;  %v1454_v37 = vpop.f32.mrb[65].mxu1 }
 0x2c8   : > { %v1455_v14 = vadd.f32 %v1454_v37, %v3204_v38  ;;  %v2549_v1 = vpop.f32.mrb[66].mxu1 }
 0x2c9   : > { %v1587_v55 = vadd.f32 %v3431_v61, %v1463_v18  ;;  %v1466_v31 = vadd.f32 %v2549_v1, %v3232_v27  ;;  %v1457_v60 = vpop.f32.mrb[67].mxu1 }
 0x2ca   : > { %v1585_v28 = vadd.f32 %v3431_v61, %v1455_v14  ;;  %v1458_v26 = vadd.f32 %v1457_v60, %v3217_v30  ;;  %v2775_v30 = vld [vmem:[%s3667_s4 + $0x20] sm:$0xff]  }
 0x2cb   : > { %v1588_v50 = vadd.f32 %v3431_v61, %v1466_v31  ;;  %v1619_v3 = vmax.f32 %v1587_v55, 0.0  ;;  %2634 = vmatprep.subr.bf16.mxu1 %v2775_v30 }
 0x2cc   : > { %v1586_v38 = vadd.f32 %v3431_v61, %v1458_v26  ;;  %v1617_v32 = vmax.f32 %v1585_v28, 0.0  ;;  %2635 = vmatpush3.bf16.msra.mxu1 %v2775_v30 }
 0x2cd   : > { %v1620_v48 = vmax.f32 %v1588_v50, 0.0 }
 0x2ce   : > { %v1618_v4 = vmax.f32 %v1586_v38, 0.0 }
 0x2cf   : > { %v1650_v27 = vpack.c.bf16 %v1620_v48, %v1619_v3 }
 0x2d0   : > { %v1649_v10 = vpack.c.bf16 %v1618_v4, %v1617_v32 }
 0x2d2   : > { %2594 = vmatprep.mubr.bf16.mxu0 %v1649_v10 }
 0x2d3   : > { %2595 = vmatmul.mubr.bf16.vlgmr.msra.gmra.mrb[96].mxu0 %v1650_v27 }
 0x2d6   : > { %v2552_v15 = vpop.f32.mrb[68].mxu1 }
 0x2d7   : > { %v1479_v51 = vadd.f32 %v2552_v15, %v3251_v41  ;;  %v1470_v16 = vpop.f32.mrb[69].mxu1 }
 0x2d8   : > { %v1471_v40 = vadd.f32 %v1470_v16, %v3239_v0  ;;  %v2553_v5 = vpop.f32.mrb[70].mxu1 }
 0x2d9   : > { %v1591_v19 = vadd.f32 %v3431_v61, %v1479_v51  ;;  %v1482_v33 = vadd.f32 %v2553_v5, %v3258_v49  ;;  %v1473_v54 = vpop.f32.mrb[71].mxu1 }
 0x2da   : > { %v1589_v18 = vadd.f32 %v3431_v61, %v1471_v40  ;;  %v1474_v37 = vadd.f32 %v1473_v54, %v3247_v20 }
 0x2db   : > { %v1592_v23 = vadd.f32 %v3431_v61, %v1482_v33  ;;  %v1623_v1 = vmax.f32 %v1591_v19, 0.0 }
 0x2dc   : > { %v1590_v14 = vadd.f32 %v3431_v61, %v1474_v37  ;;  %v1621_v41 = vmax.f32 %v1589_v18, 0.0 }
 0x2dd   : > { %v1624_v55 = vmax.f32 %v1592_v23, 0.0 }
 0x2de   : > { %v1622_v31 = vmax.f32 %v1590_v14, 0.0 }
 0x2df   : > { %v1652_v60 = vpack.c.bf16 %v1624_v55, %v1623_v1 }
 0x2e0   : > { %v1651_v0 = vpack.c.bf16 %v1622_v31, %v1621_v41 }
 0x2e2   : > { %2598 = vmatprep.mubr.bf16.mxu0 %v1651_v0 }
 0x2e3   : > { %2599 = vmatmul.mubr.bf16.gmra.mrb[100].mxu0 %v1652_v60 }
 0x2e6   : > { %v2556_v28 = vpop.f32.mrb[72].mxu1 }
 0x2e7   : > { %v1495_v49 = vadd.f32 %v2556_v28, %v3271_v9  ;;  %v1486_v26 = vpop.f32.mrb[73].mxu1 }
 0x2e8   : > { %v1487_v50 = vadd.f32 %v1486_v26, %v3262_v56  ;;  %v2557_v25 = vpop.f32.mrb[74].mxu1 }
 0x2e9   : > { %v1595_v20 = vadd.f32 %v3431_v61, %v1495_v49  ;;  %v1498_v38 = vadd.f32 %v2557_v25, %v3278_v34  ;;  %v1489_v3 = vpop.f32.mrb[75].mxu1 }
 0x2ea   : > { %v1593_v48 = vadd.f32 %v3431_v61, %v1487_v50  ;;  %v1490_v32 = vadd.f32 %v1489_v3, %v3266_v59 }
 0x2eb   : > { %v1596_v4 = vadd.f32 %v3431_v61, %v1498_v38  ;;  %v1627_v30 = vmax.f32 %v1595_v20, 0.0 }
 0x2ec   : > { %v1594_v27 = vadd.f32 %v3431_v61, %v1490_v32  ;;  %v1625_v9 = vmax.f32 %v1593_v48, 0.0 }
 0x2ed   : > { %v1628_v10 = vmax.f32 %v1596_v4, 0.0 }
 0x2ee   : > { %v1626_v15 = vmax.f32 %v1594_v27, 0.0 }
 0x2ef   : > { %v1654_v51 = vpack.c.bf16 %v1628_v10, %v1627_v30 }
 0x2f0   : > { %v1653_v56 = vpack.c.bf16 %v1626_v15, %v1625_v9 }
 0x2f2   : > { %2602 = vmatprep.mubr.bf16.mxu0 %v1653_v56 }
 0x2f3   : > { %2603 = vmatmul.mubr.bf16.gmra.mrb[104].mxu0 %v1654_v51 }
 0x2f6   : > { %v2560_v16 = vpop.f32.mrb[76].mxu1 }
 0x2f7   : > { %v1511_v34 = vadd.f32 %v2560_v16, %v3294_v35  ;;  %v1502_v40 = vpop.f32.mrb[77].mxu1 }
 0x2f8   : > { %v1503_v5 = vadd.f32 %v1502_v40, %v3285_v63  ;;  %v2561_v19 = vpop.f32.mrb[78].mxu1 }
 0x2f9   : > { %v1599_v59 = vadd.f32 %v3431_v61, %v1511_v34  ;;  %v1514_v33 = vadd.f32 %v2561_v19, %v3298_v6  ;;  %v1505_v54 = vpop.f32.mrb[79].mxu1 }
 0x2fa   : > { %v1597_v18 = vadd.f32 %v3431_v61, %v1503_v5  ;;  %v1506_v37 = vadd.f32 %v1505_v54, %v3290_v47 }
 0x2fb   : > { %v1600_v23 = vadd.f32 %v3431_v61, %v1514_v33  ;;  %v1631_v1 = vmax.f32 %v1599_v59, 0.0 }
 0x2fc   : > { %v1598_v14 = vadd.f32 %v3431_v61, %v1506_v37  ;;  %v1629_v35 = vmax.f32 %v1597_v18, 0.0 }
 0x2fd   : > { %v1632_v55 = vmax.f32 %v1600_v23, 0.0 }
 0x2fe   : > { %v1630_v41 = vmax.f32 %v1598_v14, 0.0 }
 0x2ff   : > { %v1656_v31 = vpack.c.bf16 %v1632_v55, %v1631_v1 }
 0x300   : > { %v1655_v63 = vpack.c.bf16 %v1630_v41, %v1629_v35  ;;  %v2777_v41 = vld [vmem:[%s3667_s4 + $0x30] sm:$0xff]  }
 0x302   : > { %2606 = vmatprep.mubr.bf16.mxu0 %v1655_v63 }
 0x303   : > { %2607 = vmatmul.mubr.bf16.gmra.mrb[108].mxu0 %v1656_v31 }
 0x306   : > { %v2564_v60 = vpop.f32.mrb[80].mxu1 }
 0x307   : > { %v1527_v6 = vadd.f32 %v2564_v60, %v3318_v12  ;;  %v1518_v0 = vpop.f32.mrb[81].mxu1 }
 0x308   : > { %v1519_v28 = vadd.f32 %v1518_v0, %v3302_v62  ;;  %v2565_v49 = vpop.f32.mrb[82].mxu1 }
 0x309   : > { %v1603_v47 = vadd.f32 %v3431_v61, %v1527_v6  ;;  %v1530_v26 = vadd.f32 %v2565_v49, %v3322_v13  ;;  %v1521_v50 = vpop.f32.mrb[83].mxu1 }
 0x30a   : > { %v1601_v25 = vadd.f32 %v3431_v61, %v1519_v28  ;;  %v1522_v20 = vadd.f32 %v1521_v50, %v3308_v36 }
 0x30b   : > { %v1604_v38 = vadd.f32 %v3431_v61, %v1530_v26  ;;  %v1635_v48 = vmax.f32 %v1603_v47, 0.0 }
 0x30c   : > { %v1602_v3 = vadd.f32 %v3431_v61, %v1522_v20  ;;  %v1633_v12 = vmax.f32 %v1601_v25, 0.0 }
 0x30d   : > { %v1636_v32 = vmax.f32 %v1604_v38, 0.0 }
 0x30e   : > { %v1634_v4 = vmax.f32 %v1602_v3, 0.0 }
 0x30f   : > { %v1658_v27 = vpack.c.bf16 %v1636_v32, %v1635_v48 }
 0x310   : > { %v1657_v62 = vpack.c.bf16 %v1634_v4, %v1633_v12 }
 0x312   : > { %2610 = vmatprep.mubr.bf16.mxu0 %v1657_v62 }
 0x313   : > { %2611 = vmatmul.mubr.bf16.gmra.mrb[112].mxu0 %v1658_v27 }
 0x316   : > { %v2568_v30 = vpop.f32.mrb[84].mxu1 }
 0x317   : > { %v1543_v13 = vadd.f32 %v2568_v30, %v3342_v42  ;;  %v1534_v10 = vpop.f32.mrb[85].mxu1 }
 0x318   : > { %v1535_v9 = vadd.f32 %v1534_v10, %v3326_v29  ;;  %v2569_v15 = vpop.f32.mrb[86].mxu1 }
 0x319   : > { %v1607_v36 = vadd.f32 %v3431_v61, %v1543_v13  ;;  %v1546_v51 = vadd.f32 %v2569_v15, %v3346_v7  ;;  %v1537_v56 = vpop.f32.mrb[87].mxu1  ;;  %v2776_v7 = vld [vmem:[%s3667_s4 + $0x28] sm:$0xff]  }
 0x31a   : > { %v1605_v16 = vadd.f32 %v3431_v61, %v1535_v9  ;;  %v1538_v34 = vadd.f32 %v1537_v56, %v3332_v17  ;;  %2636 = vmatprep.subr.bf16.mxu1 %v2776_v7  ;;  %v1892_v9 = vsub.s32 3, %v3043_v58 }
 0x31b   : > { %v1608_v40 = vadd.f32 %v3431_v61, %v1546_v51  ;;  %v1639_v19 = vmax.f32 %v1607_v36, 0.0  ;;  %2637 = vmatpush3.bf16.msra.mxu1 %v2776_v7 }
 0x31c   : > { %v1606_v5 = vadd.f32 %v3431_v61, %v1538_v34  ;;  %v1637_v42 = vmax.f32 %v1605_v16, 0.0  ;;  %2638 = vmatprep.subr.bf16.mxu1 %v2777_v41 }
 0x31d   : > { %v1640_v59 = vmax.f32 %v1608_v40, 0.0 }
 0x31e   : > { %v1638_v33 = vmax.f32 %v1606_v5, 0.0 }
 0x31f   : > { %v1660_v54 = vpack.c.bf16 %v1640_v59, %v1639_v19  ;;  %2639 = vmatpush3.bf16.msra.mxu1 %v2777_v41 }
 0x320   : > { %v1659_v29 = vpack.c.bf16 %v1638_v33, %v1637_v42 }
 0x322   : > { %2614 = vmatprep.mubr.bf16.mxu0 %v1659_v29 }
 0x323   : > { %2615 = vmatmul.mubr.bf16.gmra.mrb[116].mxu0 %v1660_v54 }
 0x326   : > { %v2572_v18 = vpop.f32.mrb[88].mxu1 }
 0x327   : > { %v1559_v37 = vadd.f32 %v2572_v18, %v3366_v53  ;;  %v1550_v17 = vpop.f32.mrb[89].mxu1  ;;  %v3696_v18 = vld [vmem:[#allocation4_spill] sm:$0xff] }
 0x328   : > { %v1551_v23 = vadd.f32 %v1550_v17, %v3350_v22  ;;  %v2573_v14 = vpop.f32.mrb[90].mxu1  ;;  %v3697_v17 = vld [vmem:[#allocation2_spill] sm:$0xff] }
 0x329   : > { %v1611_v1 = vadd.f32 %v3431_v61, %v1559_v37  ;;  %v1562_v55 = vadd.f32 %v2573_v14, %v3370_v39  ;;  %v1553_v35 = vpop.f32.mrb[91].mxu1  ;;  %v2778_v39 = vld [vmem:[%s3667_s4 + $0x38] sm:$0xff]  }
 0x32a   : > { %v1609_v31 = vadd.f32 %v3431_v61, %v1551_v23  ;;  %v1554_v63 = vadd.f32 %v1553_v35, %v3356_v21  ;;  %2640 = vmatprep.subr.bf16.mxu1 %v2778_v39 }
 0x32b   : > { %v1612_v53 = vadd.f32 %v3431_v61, %v1562_v55  ;;  %v1643_v60 = vmax.f32 %v1611_v1, 0.0  ;;  %2641 = vmatpush3.bf16.msra.mxu1 %v2778_v39  ;;  %v3698_v1 = vld [vmem:[#allocation5_spill] sm:$0xff] }
 0x32c   : > { %v1610_v22 = vadd.f32 %v3431_v61, %v1554_v63  ;;  %v1641_v0 = vmax.f32 %v1609_v31, 0.0  ;;  %v3699_v31 = vld [vmem:[#allocation3_spill] sm:$0xff] }
 0x32d   : > { %v1644_v6 = vmax.f32 %v1612_v53, 0.0 }
 0x32e   : > { %v1642_v28 = vmax.f32 %v1610_v22, 0.0 }
 0x32f   : > { %v1662_v49 = vpack.c.bf16 %v1644_v6, %v1643_v60 }
 0x330   : > { %v1661_v47 = vpack.c.bf16 %v1642_v28, %v1641_v0 }
 0x332   : > { %2618 = vmatprep.mubr.bf16.mxu0 %v1661_v47 }
 0x333   : > { %2619 = vmatmul.mubr.bf16.gmra.mrb[120].mxu0 %v1662_v49 }
 0x336   : > { %v2576_v21 = vpop.f32.mrb[92].mxu1 }
 0x337   : > { %v1575_v26 = vadd.f32 %v2576_v21, %v3390_v11  ;;  %v1566_v50 = vpop.f32.mrb[93].mxu1  ;;  %v3700_v21 = vld [vmem:[#allocation8_spill] sm:$0xff] }
 0x338   : > { %v1567_v25 = vadd.f32 %v1566_v50, %v3374_v24  ;;  %v2577_v20 = vpop.f32.mrb[94].mxu1 }
 0x339   : > { %v1615_v38 = vadd.f32 %v3431_v61, %v1575_v26  ;;  %v1578_v3 = vadd.f32 %v2577_v20, %v3394_v45  ;;  %v1569_v48 = vpop.f32.mrb[95].mxu1  ;;  %v2779_v45 = vld [vmem:[%s3666_s3] sm:$0xf] }
 0x33a   : > { %v1613_v32 = vadd.f32 %v3431_v61, %v1567_v25  ;;  %v1570_v12 = vadd.f32 %v1569_v48, %v3380_v52  ;;  %v3519_v15 = vrot.slane %v2779_v45, %v1892_v9  ;;  %v3701_v25 = vld [vmem:[#allocation6_spill] sm:$0xff]  ;;  %v3702_v48 = vld [vmem:[#allocation9_spill] sm:$0xff] }
 0x33b   : > { %v1616_v4 = vadd.f32 %v3431_v61, %v1578_v3  ;;  %v1647_v62 = vmax.f32 %v1615_v38, 0.0 }
 0x33c   : > { %v1614_v27 = vadd.f32 %v3431_v61, %v1570_v12  ;;  %v1645_v11 = vmax.f32 %v1613_v32, 0.0 }
 0x33d   : > { %v1648_v30 = vmax.f32 %v1616_v4, 0.0 }
 0x33e   : > { %v1646_v13 = vmax.f32 %v1614_v27, 0.0  ;;  %v3703_v27 = vld [vmem:[#allocation7_spill] sm:$0xff] }
 0x33f   : > { %v1664_v10 = vpack.c.bf16 %v1648_v30, %v1647_v62 }
 0x340   : > { %v1663_v24 = vpack.c.bf16 %v1646_v13, %v1645_v11 }
 0x342   : > { %2622 = vmatprep.mubr.bf16.mxu0 %v1663_v24 }
 0x343   : > { %2623 = vmatmul.mubr.bf16.gmra.mrb[124].mxu0 %v1664_v10 }
 0x3a6   : > { %v2596_v52 = vpop.f32.mrb[96].mxu0 }
 0x3a7   : > { %v1772_v36 = vadd.f32 %v2596_v52, %v3228_v57  ;;  %v1763_v61 = vpop.f32.mrb[97].mxu0 }
 0x3a8   : > { %v1764_v51 = vadd.f32 %v1763_v61, %v3212_v44  ;;  %v2597_v56 = vpop.f32.mrb[98].mxu0  ;;  %v3704_v61 = vld [vmem:[#allocation12_spill] sm:$0xff] }
 0x3a9   : > { %v1896_v16 = vadd.f32 %v3519_v15, %v1772_v36  ;;  %v1775_v34 = vadd.f32 %v2597_v56, %v3236_v8  ;;  %v1766_v40 = vpop.f32.mrb[99].mxu0 }
 0x3aa   : > { %v1894_v58 = vadd.f32 %v3519_v15, %v1764_v51  ;;  %v1767_v5 = vadd.f32 %v1766_v40, %v3219_v46 }
 0x3ab   : > { %v1897_v19 = vadd.f32 %v3519_v15, %v1775_v34  ;;  %v1928_v42 = vmax.f32 %v1896_v16, 0.0  ;;  %v3705_v16 = vld [vmem:[#allocation10_spill] sm:$0xff] }
 0x3ac   : > { %v1895_v59 = vadd.f32 %v3519_v15, %v1767_v5  ;;  %v1926_v57 = vmax.f32 %v1894_v58, 0.0  ;;  %v3706_v5 = vld [vmem:[#allocation13_spill] sm:$0xff] }
 0x3ad   : > { %v1929_v33 = vmax.f32 %v1897_v19, 0.0 }
 0x3ae   : > { %v1927_v54 = vmax.f32 %v1895_v59, 0.0 }
 0x3af   : > { %v1959_v29 = vpack.c.bf16 %v1929_v33, %v1928_v42  ;;  %v3707_v33 = vld [vmem:[#allocation11_spill] sm:$0xff] }
 0x3b0   : > { %v1958_v44 = vpack.c.bf16 %v1927_v54, %v1926_v57 }
 0x3b2   : > { %2642 = vmatprep.mubr.bf16.mxu1 %v1958_v44 }
 0x3b3   : > { %2643 = vmatmul.mubr.bf16.vlgmr.msra.gmra.mrb[96].mxu1 %v1959_v29 }
 0x3b6   : > { %v2600_v7 = vpop.f32.mrb[100].mxu0 }
 0x3b7   : > { %v1788_v8 = vadd.f32 %v2600_v7, %v3696_v18  ;;  %v1779_v37 = vpop.f32.mrb[101].mxu0 }
 0x3b8   : > { %v1780_v23 = vadd.f32 %v1779_v37, %v3697_v17  ;;  %v2601_v14 = vpop.f32.mrb[102].mxu0 }
 0x3b9   : > { %v1900_v46 = vadd.f32 %v3519_v15, %v1788_v8  ;;  %v1791_v55 = vadd.f32 %v2601_v14, %v3698_v1  ;;  %v1782_v35 = vpop.f32.mrb[103].mxu0  ;;  %v3708_v14 = vld [vmem:[#allocation16_spill] sm:$0xff] }
 0x3ba   : > { %v1898_v41 = vadd.f32 %v3519_v15, %v1780_v23  ;;  %v1783_v63 = vadd.f32 %v1782_v35, %v3699_v31 }
 0x3bb   : > { %v1901_v53 = vadd.f32 %v3519_v15, %v1791_v55  ;;  %v1932_v60 = vmax.f32 %v1900_v46, 0.0  ;;  %v3709_v55 = vld [vmem:[#allocation14_spill] sm:$0xff] }
 0x3bc   : > { %v1899_v22 = vadd.f32 %v3519_v15, %v1783_v63  ;;  %v1930_v39 = vmax.f32 %v1898_v41, 0.0  ;;  %v3710_v63 = vld [vmem:[#allocation17_spill] sm:$0xff] }
 0x3bd   : > { %v1933_v6 = vmax.f32 %v1901_v53, 0.0 }
 0x3be   : > { %v1931_v0 = vmax.f32 %v1899_v22, 0.0 }
 0x3bf   : > { %v1961_v28 = vpack.c.bf16 %v1933_v6, %v1932_v60  ;;  %v3711_v6 = vld [vmem:[#allocation15_spill] sm:$0xff] }
 0x3c0   : > { %v1960_v49 = vpack.c.bf16 %v1931_v0, %v1930_v39 }
 0x3c2   : > { %2646 = vmatprep.mubr.bf16.mxu1 %v1960_v49 }
 0x3c3   : > { %2647 = vmatmul.mubr.bf16.gmra.mrb[100].mxu1 %v1961_v28 }
 0x3c6   : > { %v2604_v47 = vpop.f32.mrb[104].mxu0 }
 0x3c7   : > { %v1804_v26 = vadd.f32 %v2604_v47, %v3700_v21  ;;  %v1795_v50 = vpop.f32.mrb[105].mxu0 }
 0x3c8   : > { %v1796_v20 = vadd.f32 %v1795_v50, %v3701_v25  ;;  %v2605_v38 = vpop.f32.mrb[106].mxu0 }
 0x3c9   : > { %v1904_v3 = vadd.f32 %v3519_v15, %v1804_v26  ;;  %v1807_v32 = vadd.f32 %v2605_v38, %v3702_v48  ;;  %v1798_v12 = vpop.f32.mrb[107].mxu0  ;;  %v3712_v38 = vld [vmem:[#allocation20_spill] sm:$0xff] }
 0x3ca   : > { %v1902_v4 = vadd.f32 %v3519_v15, %v1796_v20  ;;  %v1799_v62 = vadd.f32 %v1798_v12, %v3703_v27 }
 0x3cb   : > { %v1905_v30 = vadd.f32 %v3519_v15, %v1807_v32  ;;  %v1936_v13 = vmax.f32 %v1904_v3, 0.0  ;;  %v3713_v32 = vld [vmem:[#allocation18_spill] sm:$0xff] }
 0x3cc   : > { %v1903_v11 = vadd.f32 %v3519_v15, %v1799_v62  ;;  %v1934_v24 = vmax.f32 %v1902_v4, 0.0  ;;  %v3714_v62 = vld [vmem:[#allocation21_spill] sm:$0xff] }
 0x3cd   : > { %v1937_v10 = vmax.f32 %v1905_v30, 0.0 }
 0x3ce   : > { %v1935_v9 = vmax.f32 %v1903_v11, 0.0 }
 0x3cf   : > { %v1963_v45 = vpack.c.bf16 %v1937_v10, %v1936_v13  ;;  %v3715_v10 = vld [vmem:[#allocation19_spill] sm:$0xff] }
 0x3d0   : > { %v1962_v52 = vpack.c.bf16 %v1935_v9, %v1934_v24 }
 0x3d2   : > { %2650 = vmatprep.mubr.bf16.mxu1 %v1962_v52 }
 0x3d3   : > { %2651 = vmatmul.mubr.bf16.gmra.mrb[104].mxu1 %v1963_v45 }
 0x3d6   : > { %v2608_v36 = vpop.f32.mrb[108].mxu0 }
 0x3d7   : > { %v1820_v51 = vadd.f32 %v2608_v36, %v3704_v61  ;;  %v1811_v56 = vpop.f32.mrb[109].mxu0 }
 0x3d8   : > { %v1812_v34 = vadd.f32 %v1811_v56, %v3705_v16  ;;  %v2609_v40 = vpop.f32.mrb[110].mxu0 }
 0x3d9   : > { %v1908_v58 = vadd.f32 %v3519_v15, %v1820_v51  ;;  %v1823_v19 = vadd.f32 %v2609_v40, %v3706_v5  ;;  %v1814_v59 = vpop.f32.mrb[111].mxu0  ;;  %v3716_v40 = vld [vmem:[#allocation24_spill] sm:$0xff] }
 0x3da   : > { %v1906_v42 = vadd.f32 %v3519_v15, %v1812_v34  ;;  %v1815_v57 = vadd.f32 %v1814_v59, %v3707_v33 }
 0x3db   : > { %v1909_v54 = vadd.f32 %v3519_v15, %v1823_v19  ;;  %v1940_v44 = vmax.f32 %v1908_v58, 0.0  ;;  %v3717_v19 = vld [vmem:[#allocation22_spill] sm:$0xff] }
 0x3dc   : > { %v1907_v29 = vadd.f32 %v3519_v15, %v1815_v57  ;;  %v1938_v18 = vmax.f32 %v1906_v42, 0.0  ;;  %v3718_v57 = vld [vmem:[#allocation25_spill] sm:$0xff] }
 0x3dd   : > { %v1941_v7 = vmax.f32 %v1909_v54, 0.0 }
 0x3de   : > { %v1939_v8 = vmax.f32 %v1907_v29, 0.0 }
 0x3df   : > { %v1965_v37 = vpack.c.bf16 %v1941_v7, %v1940_v44  ;;  %v3719_v7 = vld [vmem:[#allocation23_spill] sm:$0xff] }
 0x3e0   : > { %v1964_v17 = vpack.c.bf16 %v1939_v8, %v1938_v18 }
 0x3e2   : > { %2654 = vmatprep.mubr.bf16.mxu1 %v1964_v17 }
 0x3e3   : > { %2655 = vmatmul.mubr.bf16.gmra.mrb[108].mxu1 %v1965_v37 }
 0x3e6   : > { %v2612_v23 = vpop.f32.mrb[112].mxu0 }
 0x3e7   : > { %v1836_v46 = vadd.f32 %v2612_v23, %v3708_v14  ;;  %v1827_v1 = vpop.f32.mrb[113].mxu0 }
 0x3e8   : > { %v1828_v35 = vadd.f32 %v1827_v1, %v3709_v55  ;;  %v2613_v41 = vpop.f32.mrb[114].mxu0 }
 0x3e9   : > { %v1912_v31 = vadd.f32 %v3519_v15, %v1836_v46  ;;  %v1839_v53 = vadd.f32 %v2613_v41, %v3710_v63  ;;  %v1830_v22 = vpop.f32.mrb[115].mxu0  ;;  %v3720_v63 = vld [vmem:[#allocation26_spill] sm:$0xff] }
 0x3ea   : > { %v1910_v60 = vadd.f32 %v3519_v15, %v1828_v35  ;;  %v1831_v39 = vadd.f32 %v1830_v22, %v3711_v6 }
 0x3eb   : > { %v1913_v0 = vadd.f32 %v3519_v15, %v1839_v53  ;;  %v1944_v49 = vmax.f32 %v1912_v31, 0.0 }
 0x3ec   : > { %v1911_v28 = vadd.f32 %v3519_v15, %v1831_v39  ;;  %v1942_v21 = vmax.f32 %v1910_v60, 0.0 }
 0x3ed   : > { %v1945_v47 = vmax.f32 %v1913_v0, 0.0 }
 0x3ee   : > { %v1943_v26 = vmax.f32 %v1911_v28, 0.0  ;;  %v3721_v28 = vld [vmem:[#allocation27_spill] sm:$0xff] }
 0x3ef   : > { %v1967_v50 = vpack.c.bf16 %v1945_v47, %v1944_v49 }
 0x3f0   : > { %v1966_v25 = vpack.c.bf16 %v1943_v26, %v1942_v21 }
 0x3f2   : > { %2658 = vmatprep.mubr.bf16.mxu1 %v1966_v25 }
 0x3f3   : > { %2659 = vmatmul.mubr.bf16.gmra.mrb[112].mxu1 %v1967_v50 }
 0x3f6   : > { %v2616_v20 = vpop.f32.mrb[116].mxu0 }
 0x3f7   : > { %v1852_v3 = vadd.f32 %v2616_v20, %v3712_v38  ;;  %v1843_v48 = vpop.f32.mrb[117].mxu0 }
 0x3f8   : > { %v1844_v12 = vadd.f32 %v1843_v48, %v3713_v32  ;;  %v2617_v4 = vpop.f32.mrb[118].mxu0 }
 0x3f9   : > { %v1916_v27 = vadd.f32 %v3519_v15, %v1852_v3  ;;  %v1855_v30 = vadd.f32 %v2617_v4, %v3714_v62  ;;  %v1846_v11 = vpop.f32.mrb[119].mxu0 }
 0x3fa   : > { %v1914_v13 = vadd.f32 %v3519_v15, %v1844_v12  ;;  %v1847_v24 = vadd.f32 %v1846_v11, %v3715_v10 }
 0x3fb   : > { %v1917_v9 = vadd.f32 %v3519_v15, %v1855_v30  ;;  %v1948_v52 = vmax.f32 %v1916_v27, 0.0 }
 0x3fc   : > { %v1915_v45 = vadd.f32 %v3519_v15, %v1847_v24  ;;  %v1946_v61 = vmax.f32 %v1914_v13, 0.0 }
 0x3fd   : > { %v1949_v36 = vmax.f32 %v1917_v9, 0.0 }
 0x3fe   : > { %v1947_v51 = vmax.f32 %v1915_v45, 0.0 }
 0x3ff   : > { %v1969_v56 = vpack.c.bf16 %v1949_v36, %v1948_v52 }
 0x400   : > { %v1968_v16 = vpack.c.bf16 %v1947_v51, %v1946_v61 }
 0x402   : > { %2662 = vmatprep.mubr.bf16.mxu1 %v1968_v16 }
 0x403   : > { %2663 = vmatmul.mubr.bf16.gmra.mrb[116].mxu1 %v1969_v56 }
 0x406   : > { %v2620_v34 = vpop.f32.mrb[120].mxu0 }
 0x407   : > { %v1868_v58 = vadd.f32 %v2620_v34, %v3716_v40  ;;  %v1859_v5 = vpop.f32.mrb[121].mxu0 }
 0x408   : > { %v1860_v59 = vadd.f32 %v1859_v5, %v3717_v19  ;;  %v2621_v42 = vpop.f32.mrb[122].mxu0 }
 0x409   : > { %v1920_v33 = vadd.f32 %v3519_v15, %v1868_v58  ;;  %v1871_v54 = vadd.f32 %v2621_v42, %v3718_v57  ;;  %v1862_v29 = vpop.f32.mrb[123].mxu0 }
 0x40a   : > { %v1918_v44 = vadd.f32 %v3519_v15, %v1860_v59  ;;  %v1863_v18 = vadd.f32 %v1862_v29, %v3719_v7 }
 0x40b   : > { %v1921_v8 = vadd.f32 %v3519_v15, %v1871_v54  ;;  %v1952_v17 = vmax.f32 %v1920_v33, 0.0 }
 0x40c   : > { %v1919_v37 = vadd.f32 %v3519_v15, %v1863_v18  ;;  %v1950_v14 = vmax.f32 %v1918_v44, 0.0 }
 0x40d   : > { %v1953_v23 = vmax.f32 %v1921_v8, 0.0 }
 0x40e   : > { %v1951_v46 = vmax.f32 %v1919_v37, 0.0 }
 0x40f   : > { %v1971_v1 = vpack.c.bf16 %v1953_v23, %v1952_v17 }
 0x410   : > { %v1970_v55 = vpack.c.bf16 %v1951_v46, %v1950_v14 }
 0x412   : > { %2666 = vmatprep.mubr.bf16.mxu1 %v1970_v55 }
 0x413   : > { %2667 = vmatmul.mubr.bf16.gmra.mrb[120].mxu1 %v1971_v1 }
 0x416   : > { %v2624_v35 = vpop.f32.mrb[124].mxu0 }
 0x417   : > { %v1884_v41 = vadd.f32 %v2624_v35, %v3392_v2  ;;  %v1875_v31 = vpop.f32.mrb[125].mxu0 }
 0x418   : > { %v1876_v53 = vadd.f32 %v1875_v31, %v3720_v63  ;;  %v2625_v22 = vpop.f32.mrb[126].mxu0 }
 0x419   : > { %v1924_v60 = vadd.f32 %v3519_v15, %v1884_v41  ;;  %v1887_v6 = vadd.f32 %v2625_v22, %v3396_v43  ;;  %v1878_v39 = vpop.f32.mrb[127].mxu0  ;;  %v3589_v43 = vld [vmem:[%s3668_s5] ss:$0 sm:$0xff] }
 0x41a   : > { %v1922_v0 = vadd.f32 %v3519_v15, %v1876_v53  ;;  %v1879_v49 = vadd.f32 %v1878_v39, %v3721_v28 }
 0x41b   : > { %v1925_v47 = vadd.f32 %v3519_v15, %v1887_v6  ;;  %v1956_v26 = vmax.f32 %v1924_v60, 0.0 }
 0x41c   : > { %v1923_v21 = vadd.f32 %v3519_v15, %v1879_v49  ;;  %v1954_v50 = vmax.f32 %v1922_v0, 0.0 }
 0x41d   : > { %v1957_v2 = vmax.f32 %v1925_v47, 0.0 }
 0x41e   : > { %v1955_v25 = vmax.f32 %v1923_v21, 0.0 }
 0x41f   : > { %v1973_v20 = vpack.c.bf16 %v1957_v2, %v1956_v26 }
 0x420   : > { %v1972_v38 = vpack.c.bf16 %v1955_v25, %v1954_v50 }
 0x422   : > { %2670 = vmatprep.mubr.bf16.mxu1 %v1972_v38 }
 0x423   : > { %2671 = vmatmul.mubr.bf16.gmra.mrb[124].mxu1 %v1973_v20 }
 0x486   : > { %v2644_v15 = vpop.f32.mrb[96].mxu1 }
 0x487   : > { %v2088_v3 = vadd.f32 %v2644_v15, %v3589_v43  ;;  %v2079_v48 = vpop.f32.mrb[97].mxu1 }
 0x488   : > { %v2080_v32 = vadd.f32 %v3589_v43, %v2079_v48  ;;  %v2645_v12 = vpop.f32.mrb[98].mxu1 }
 0x489   : > { %2208 = vst [vmem:[%s3594_s10 + $0x10] sm:$0xff] %v2088_v3  ;;  %v2091_v4 = vadd.f32 %v2645_v12, %v3589_v43  ;;  %v2082_v27 = vpop.f32.mrb[99].mxu1 }
 0x48a   : > { %2206 = vst [vmem:[%s3594_s10] sm:$0xff] %v2080_v32  ;;  %v2083_v62 = vadd.f32 %v3589_v43, %v2082_v27 }
 0x48b   : > { %2209 = vst [vmem:[%s3594_s10 + $0x18] sm:$0xff] %v2091_v4 }
 0x48c   : > { %2207 = vst [vmem:[%s3594_s10 + $0x8] sm:$0xff] %v2083_v62 }
 0x496   : > { %v2648_v30 = vpop.f32.mrb[100].mxu1 }
 0x497   : > { %v2104_v11 = vadd.f32 %v2648_v30, %v3589_v43  ;;  %v2095_v13 = vpop.f32.mrb[101].mxu1 }
 0x498   : > { %v2096_v10 = vadd.f32 %v3589_v43, %v2095_v13  ;;  %v2649_v24 = vpop.f32.mrb[102].mxu1 }
 0x499   : > { %2212 = vst [vmem:[%s3594_s10 + $0x30] sm:$0xff] %v2104_v11  ;;  %v2107_v9 = vadd.f32 %v2649_v24, %v3589_v43  ;;  %v2098_v45 = vpop.f32.mrb[103].mxu1 }
 0x49a   : > { %2210 = vst [vmem:[%s3594_s10 + $0x20] sm:$0xff] %v2096_v10  ;;  %v2099_v52 = vadd.f32 %v3589_v43, %v2098_v45 }
 0x49b   : > { %2213 = vst [vmem:[%s3594_s10 + $0x38] sm:$0xff] %v2107_v9 }
 0x49c   : > { %2211 = vst [vmem:[%s3594_s10 + $0x28] sm:$0xff] %v2099_v52 }
 0x4a6   : > { %v2652_v36 = vpop.f32.mrb[104].mxu1 }
 0x4a7   : > { %v2120_v61 = vadd.f32 %v2652_v36, %v3589_v43  ;;  %v2111_v51 = vpop.f32.mrb[105].mxu1 }
 0x4a8   : > { %v2112_v56 = vadd.f32 %v3589_v43, %v2111_v51  ;;  %v2653_v16 = vpop.f32.mrb[106].mxu1 }
 0x4a9   : > { %2216 = vst [vmem:[%s3594_s10 + $0x50] sm:$0xff] %v2120_v61  ;;  %v2123_v34 = vadd.f32 %v2653_v16, %v3589_v43  ;;  %v2114_v40 = vpop.f32.mrb[107].mxu1 }
 0x4aa   : > { %2214 = vst [vmem:[%s3594_s10 + $0x40] sm:$0xff] %v2112_v56  ;;  %v2115_v58 = vadd.f32 %v3589_v43, %v2114_v40 }
 0x4ab   : > { %2217 = vst [vmem:[%s3594_s10 + $0x58] sm:$0xff] %v2123_v34 }
 0x4ac   : > { %2215 = vst [vmem:[%s3594_s10 + $0x48] sm:$0xff] %v2115_v58 }
 0x4b6   : > { %v2656_v5 = vpop.f32.mrb[108].mxu1 }
 0x4b7   : > { %v2136_v19 = vadd.f32 %v2656_v5, %v3589_v43  ;;  %v2127_v59 = vpop.f32.mrb[109].mxu1 }
 0x4b8   : > { %v2128_v42 = vadd.f32 %v3589_v43, %v2127_v59  ;;  %v2657_v33 = vpop.f32.mrb[110].mxu1 }
 0x4b9   : > { %2220 = vst [vmem:[%s3594_s10 + $0x70] sm:$0xff] %v2136_v19  ;;  %v2139_v57 = vadd.f32 %v2657_v33, %v3589_v43  ;;  %v2130_v54 = vpop.f32.mrb[111].mxu1 }
 0x4ba   : > { %2218 = vst [vmem:[%s3594_s10 + $0x60] sm:$0xff] %v2128_v42  ;;  %v2131_v29 = vadd.f32 %v3589_v43, %v2130_v54 }
 0x4bb   : > { %2221 = vst [vmem:[%s3594_s10 + $0x78] sm:$0xff] %v2139_v57 }
 0x4bc   : > { %2219 = vst [vmem:[%s3594_s10 + $0x68] sm:$0xff] %v2131_v29 }
 0x4c6   : > { %v2660_v44 = vpop.f32.mrb[112].mxu1 }
 0x4c7   : > { %v2152_v7 = vadd.f32 %v2660_v44, %v3589_v43  ;;  %v2143_v18 = vpop.f32.mrb[113].mxu1 }
 0x4c8   : > { %v2144_v8 = vadd.f32 %v3589_v43, %v2143_v18  ;;  %v2661_v37 = vpop.f32.mrb[114].mxu1 }
 0x4c9   : > { %2224 = vst [vmem:[%s3594_s10 + $0x90] sm:$0xff] %v2152_v7  ;;  %v2155_v17 = vadd.f32 %v2661_v37, %v3589_v43  ;;  %v2146_v23 = vpop.f32.mrb[115].mxu1 }
 0x4ca   : > { %2222 = vst [vmem:[%s3594_s10 + $0x80] sm:$0xff] %v2144_v8  ;;  %v2147_v14 = vadd.f32 %v3589_v43, %v2146_v23 }
 0x4cb   : > { %2225 = vst [vmem:[%s3594_s10 + $0x98] sm:$0xff] %v2155_v17 }
 0x4cc   : > { %2223 = vst [vmem:[%s3594_s10 + $0x88] sm:$0xff] %v2147_v14 }
 0x4d6   : > { %v2664_v46 = vpop.f32.mrb[116].mxu1 }
 0x4d7   : > { %v2168_v1 = vadd.f32 %v2664_v46, %v3589_v43  ;;  %v2159_v55 = vpop.f32.mrb[117].mxu1 }
 0x4d8   : > { %v2160_v35 = vadd.f32 %v3589_v43, %v2159_v55  ;;  %v2665_v41 = vpop.f32.mrb[118].mxu1 }
 0x4d9   : > { %2228 = vst [vmem:[%s3594_s10 + $0xb0] sm:$0xff] %v2168_v1  ;;  %v2171_v31 = vadd.f32 %v2665_v41, %v3589_v43  ;;  %v2162_v63 = vpop.f32.mrb[119].mxu1 }
 0x4da   : > { %2226 = vst [vmem:[%s3594_s10 + $0xa0] sm:$0xff] %v2160_v35  ;;  %v2163_v53 = vadd.f32 %v3589_v43, %v2162_v63 }
 0x4db   : > { %2229 = vst [vmem:[%s3594_s10 + $0xb8] sm:$0xff] %v2171_v31 }
 0x4dc   : > { %2227 = vst [vmem:[%s3594_s10 + $0xa8] sm:$0xff] %v2163_v53 }
 0x4e6   : > { %v2668_v22 = vpop.f32.mrb[120].mxu1 }
 0x4e7   : > { %v2184_v60 = vadd.f32 %v2668_v22, %v3589_v43  ;;  %v2175_v6 = vpop.f32.mrb[121].mxu1 }
 0x4e8   : > { %v2176_v39 = vadd.f32 %v3589_v43, %v2175_v6  ;;  %v2669_v0 = vpop.f32.mrb[122].mxu1 }
 0x4e9   : > { %2232 = vst [vmem:[%s3594_s10 + $0xd0] sm:$0xff] %v2184_v60  ;;  %v2187_v28 = vadd.f32 %v2669_v0, %v3589_v43  ;;  %v2178_v49 = vpop.f32.mrb[123].mxu1 }
 0x4ea   : > { %2230 = vst [vmem:[%s3594_s10 + $0xc0] sm:$0xff] %v2176_v39  ;;  %v2179_v47 = vadd.f32 %v3589_v43, %v2178_v49 }
 0x4eb   : > { %2233 = vst [vmem:[%s3594_s10 + $0xd8] sm:$0xff] %v2187_v28 }
 0x4ec   : > { %2231 = vst [vmem:[%s3594_s10 + $0xc8] sm:$0xff] %v2179_v47 }
 0x4f6   : > { %v2672_v21 = vpop.f32.mrb[124].mxu1 }
 0x4f7   : > { %v2200_v26 = vadd.f32 %v2672_v21, %v3589_v43  ;;  %v2191_v2 = vpop.f32.mrb[125].mxu1 }
 0x4f8   : > { %v2192_v50 = vadd.f32 %v3589_v43, %v2191_v2  ;;  %v2673_v25 = vpop.f32.mrb[126].mxu1 }
 0x4f9   : > { %2236 = vst [vmem:[%s3594_s10 + $0xf0] sm:$0xff] %v2200_v26  ;;  %v2203_v20 = vadd.f32 %v2673_v25, %v3589_v43  ;;  %v2194_v38 = vpop.f32.mrb[127].mxu1 }
 0x4fa   : > { %2234 = vst [vmem:[%s3594_s10 + $0xe0] sm:$0xff] %v2192_v50  ;;  %v2195_v15 = vadd.f32 %v3589_v43, %v2194_v38 }
 0x4fb   : > { %2237 = vst [vmem:[%s3594_s10 + $0xf8] sm:$0xff] %v2203_v20 }
 0x4fc   : > { %2235 = vst [vmem:[%s3594_s10 + $0xe8] sm:$0xff] %v2195_v15 }
 0x4fd PF: > { %s16_s21 = sadd.s32 1, %s2786_s21  }
 0x4fe   : > { %p13_p4 = scmp.ge.s32.totalorder %s16_s21, 4  }
 0x500   :  { %15 = sbr.rel (!%p13_p4) target bundleno = 1 (0x1), region = 74 }

</bundles_post_ra>
